<compile_context>
chip_gen: v7x
topology: tpu7x:2x2x1
jax: 0.10.0
libtpu: 0.0.40
codegen_flags: <defaults>
</compile_context>

<pallas_src>
import jax
import jax.numpy as jnp
from jax import lax
from jax.experimental import pallas as pl
from jax.experimental.pallas import tpu as pltpu


# ----------------------------------------------------------------------------
# LSTM kernel, grid over layers (sequential / "arbitrary").
#   gx0_ref : (T*Bp, 4H) bf16   layer-0 gate pre-activations (bias folded in),
#                               resident across all grid steps
#   wih_ref : (1, H, 4H) bf16   this layer's fused input weights (unused l=0)
#   whh_ref : (1, H, 4H) bf16   this layer's fused recurrent weights
#   b_ref   : (1, 1, 4H) f32    this layer's fused bias (unused for l=0)
#   h0/c0   : (1, Bp, H) f32
#   out_ref : (T*Bp, H) bf16    resident block; holds the *current* layer's
#                               full output sequence (next layer reads it)
#   hn/cn   : (1, Bp, H) f32
#   gx_scr  : (T*Bp, 4H) bf16   gate pre-activations of the current layer
# ----------------------------------------------------------------------------
def _lstm_kernel(gx0_ref, wih_ref, whh_ref, b_ref, h0_ref, c0_ref,
                 out_ref, hn_ref, cn_ref, gx_scr):
    l = pl.program_id(0)
    H = whh_ref.shape[1]
    Bp = h0_ref.shape[1]
    T = out_ref.shape[0] // Bp
    f32, bf16 = jnp.float32, jnp.bfloat16

    # ---- gate pre-activations for the whole sequence (hoisted off the
    #      recurrence): one (T*Bp, H) @ (H, 4H) matmul per layer -------------
    @pl.when(l == 0)
    def _():
        gx_scr[...] = gx0_ref[...]                    # precomputed in wrapper

    @pl.when(l > 0)
    def _():
        prev = out_ref[...]                           # previous layer output (bf16)
        gx_scr[...] = (jnp.dot(prev, wih_ref[0],
                               preferred_element_type=f32)
                       + b_ref[0]).astype(bf16)

    whh_l = whh_ref[0]                                # (H, 4H) bf16, hoisted
    # lanes [2H, 3H) are the "g" (cell) gate -> tanh; others -> sigmoid
    lane = lax.broadcasted_iota(jnp.int32, (1, 4 * H), 1)
    g_mask = (lane >= 2 * H) & (lane < 3 * H)

    h = h0_ref[0]                                     # (Bp, H) f32
    c = c0_ref[0]                                     # (Bp, H) f32

    # Serial recurrence: a single fused (Bp,H)@(H,4H) matmul per step.
    # T is small & static -> unrolled Python loop (LLO-visible).
    for t in range(T):
        r = t * Bp
        gates = (gx_scr[r:r + Bp, :].astype(f32)
                 + jnp.dot(h.astype(bf16), whh_l,
                           preferred_element_type=f32))          # (Bp, 4H)
        act = jnp.where(g_mask, jnp.tanh(gates), jax.nn.sigmoid(gates))
        i_g = act[:, 0 * H:1 * H]
        f_g = act[:, 1 * H:2 * H]
        g_g = act[:, 2 * H:3 * H]
        o_g = act[:, 3 * H:4 * H]
        c = f_g * c + i_g * g_g
        h = o_g * jnp.tanh(c)
        out_ref[r:r + Bp, :] = h.astype(bf16)         # full (8,·) sublane tile

    hn_ref[0] = h
    cn_ref[0] = c


def fused_lstm(gx0, wih_rest, whh, b_rest, h0, c0):
    num_layers, Bp, H = h0.shape
    TB = gx0.shape[0]
    out_shapes = (jax.ShapeDtypeStruct((TB, H), jnp.bfloat16),
                  jax.ShapeDtypeStruct((num_layers, Bp, H), jnp.float32),
                  jax.ShapeDtypeStruct((num_layers, Bp, H), jnp.float32))
    return pl.pallas_call(
        _lstm_kernel,
        out_shape=out_shapes,
        grid_spec=pltpu.PrefetchScalarGridSpec(
            num_scalar_prefetch=0,
            grid=(num_layers,),
            in_specs=[
                pl.BlockSpec((TB, 4 * H), lambda l: (0, 0)),       # gx0 resident
                pl.BlockSpec((1, H, 4 * H), lambda l: (l, 0, 0)),  # wih (streamed)
                pl.BlockSpec((1, H, 4 * H), lambda l: (l, 0, 0)),  # whh (streamed)
                pl.BlockSpec((1, 1, 4 * H), lambda l: (l, 0, 0)),  # bias
                pl.BlockSpec((1, Bp, H), lambda l: (l, 0, 0)),     # h0
                pl.BlockSpec((1, Bp, H), lambda l: (l, 0, 0)),     # c0
            ],
            out_specs=(
                pl.BlockSpec((TB, H), lambda l: (0, 0)),           # out resident
                pl.BlockSpec((1, Bp, H), lambda l: (l, 0, 0)),     # h_n
                pl.BlockSpec((1, Bp, H), lambda l: (l, 0, 0)),     # c_n
            ),
            scratch_shapes=[pltpu.VMEM((TB, 4 * H), jnp.bfloat16)],
        ),
        compiler_params=pltpu.CompilerParams(
            dimension_semantics=("arbitrary",)),
    )(gx0, wih_rest, whh, b_rest, h0, c0)


# ----------------------------------------------------------------------------
# Attention + output head kernel (single grid step).
#   attn = softmax(h_d @ h_e^T); ctx = attn @ h_e
#   y = log_softmax(tanh(ctx@W1c + h_d@W1h + z@W1z + b1) @ W2 + b2)
# Output is a single contiguous (Bp*T, V) slab (batch-major); the wrapper
# transposes back to time-major.
# ----------------------------------------------------------------------------
def _attn_head_kernel(hd_ref, he_ref, z_ref, w1c_ref, w1h_ref, w1z_ref,
                      b1_ref, w2_ref, b2_ref, out_ref):
    T, Bp, H = hd_ref.shape
    f32, bf16 = jnp.float32, jnp.bfloat16

    hd = hd_ref[...]                                  # (T, Bp, H) bf16
    he = he_ref[...].astype(bf16)                     # (S, Bp, H) bf16

    # batch-major views for the two batched contractions
    hd_bm = jnp.transpose(hd, (1, 0, 2))              # (Bp, T, H)
    he_bm = jnp.transpose(he, (1, 0, 2))              # (Bp, S, H)

    # scores + softmax (f32)
    s = jnp.einsum("bth,bsh->bts", hd_bm, he_bm,
                   preferred_element_type=f32)        # (Bp, T, S)
    s = s - jnp.max(s, axis=-1, keepdims=True)
    p = jnp.exp(s)
    attn = p * pl.reciprocal(jnp.sum(p, axis=-1, keepdims=True), approx=True)

    # context
    ctx = jnp.einsum("bts,bsh->bth", attn.astype(bf16), he_bm,
                     preferred_element_type=f32)      # (Bp, T, H)

    # flatten to (Bp*T, .) so linear1/linear2 run as a few big matmuls
    hd_flat = hd_bm.reshape(Bp * T, H)                # bf16
    ctx_flat = ctx.reshape(Bp * T, H).astype(bf16)

    # z term of linear1 is time-invariant: one (Bp,L)@(L,E) matmul + broadcast
    zc = jnp.dot(z_ref[...].astype(bf16), w1z_ref[...],
                 preferred_element_type=f32)          # (Bp, E)
    E = zc.shape[-1]
    z_flat = jnp.broadcast_to(zc[:, None, :], (Bp, T, E)).reshape(Bp * T, E)

    # linear1 with the concat-matmul split (no lane-axis concatenate)
    pre = (jnp.dot(ctx_flat, w1c_ref[...], preferred_element_type=f32)
           + jnp.dot(hd_flat, w1h_ref[...], preferred_element_type=f32)
           + z_flat + b1_ref[...])
    hid = jnp.tanh(pre)                               # (Bp*T, E) f32

    logits = (jnp.dot(hid.astype(bf16), w2_ref[...],
                      preferred_element_type=f32) + b2_ref[...])   # (Bp*T, V)

    # exact log_softmax in f32
    m = jnp.max(logits, axis=-1, keepdims=True)
    sh = logits - m
    lse = jnp.log(jnp.sum(jnp.exp(sh), axis=-1, keepdims=True))
    out_ref[...] = sh - lse                           # one contiguous store


def attn_head(h_d, h_e, z, w1c, w1h, w1z, b1, w2, b2):
    """h_d: (T,Bp,H) bf16, h_e: (S,Bp,H), z: (Bp,L) -> (Bp*T, V) log-probs."""
    T, Bp, H = h_d.shape
    S = h_e.shape[0]
    L = z.shape[-1]
    E = w1c.shape[-1]
    V = w2.shape[-1]
    return pl.pallas_call(
        _attn_head_kernel,
        out_shape=jax.ShapeDtypeStruct((Bp * T, V), jnp.float32),
        grid_spec=pltpu.PrefetchScalarGridSpec(
            num_scalar_prefetch=0,
            grid=(1,),
            in_specs=[
                pl.BlockSpec((T, Bp, H), lambda i: (0, 0, 0)),
                pl.BlockSpec((S, Bp, H), lambda i: (0, 0, 0)),
                pl.BlockSpec((Bp, L), lambda i: (0, 0)),
                pl.BlockSpec((H, E), lambda i: (0, 0)),
                pl.BlockSpec((H, E), lambda i: (0, 0)),
                pl.BlockSpec((L, E), lambda i: (0, 0)),
                pl.BlockSpec((1, E), lambda i: (0, 0)),
                pl.BlockSpec((E, V), lambda i: (0, 0)),
                pl.BlockSpec((1, V), lambda i: (0, 0)),
            ],
            out_specs=pl.BlockSpec((Bp * T, V), lambda i: (0, 0)),
        ),
        compiler_params=pltpu.CompilerParams(
            dimension_semantics=("arbitrary",)),
    )(h_d, h_e, z, w1c, w1h, w1z, b1, w2, b2)


# ----------------------------------------------------------------------------
# Parameter init (deterministic; shapes mirror the PyTorch module __init__).
# Matmul-facing weights stored bf16 with gates fused on the output (4H) axis.
# linear2.weight is tied to the embedding (as in the PyTorch module).
# ----------------------------------------------------------------------------
def init_params(key, vocab_size, embed_size, hidden_size, latent_size,
                num_layers):
    E, H, Lz, V = embed_size, hidden_size, latent_size, vocab_size
    f32, bf16 = jnp.float32, jnp.bfloat16
    keys = jax.random.split(key, 4 * num_layers + 4)
    emb = (jax.random.uniform(keys[0], (V, E)) - 0.5) * 2.0

    scale = 0.2
    wih_rest = [jnp.zeros((H, 4 * H), f32)]     # layer-0 slot unused
    b_rest = [jnp.zeros((1, 4 * H), f32)]
    whh_all = []
    wih0_x = wih0_z = b0 = None
    for l in range(num_layers):
        k0, k1, k2, k3 = keys[1 + 4 * l: 5 + 4 * l]
        layer_in = (E + Lz) if l == 0 else H
        # PyTorch layout: (4H, in), gate order i, f, g, o
        w_ih = jax.random.normal(k0, (4 * H, layer_in)) * scale
        w_hh = jax.random.normal(k1, (4 * H, H)) * scale
        b_ih = jax.random.normal(k2, (4 * H,)) * scale
        b_hh = jax.random.normal(k3, (4 * H,)) * scale
        bsum = (b_ih + b_hh).reshape(1, 4 * H)
        w_ih_T = w_ih.T                          # (in, 4H), gate order preserved
        if l == 0:
            wih0_x = w_ih_T[:E]                  # (E, 4H)  x part of concat
            wih0_z = w_ih_T[E:]                  # (Lz, 4H) z part of concat
            b0 = bsum
        else:
            wih_rest.append(w_ih_T)              # (H, 4H)
            b_rest.append(bsum)
        whh_all.append(w_hh.T)                   # (H, 4H)

    k_w1, k_b1, k_b2 = keys[-3], keys[-2], keys[-1]
    w1 = jax.random.normal(k_w1, (E, 2 * H + Lz)) * scale   # PyTorch (out, in)
    b1 = jax.random.normal(k_b1, (E,)) * scale
    b2 = jax.random.normal(k_b2, (V,)) * scale
    w1_T = w1.T                                              # (2H+L, E)
    # concat order in forward: [context, h_d, z]
    w1c, w1h, w1z = w1_T[:H], w1_T[H:2 * H], w1_T[2 * H:]

    return {
        "emb": jnp.asarray(emb, f32),
        "wih0_x": jnp.asarray(wih0_x, bf16),                  # (E, 4H)
        "wih0_z": jnp.asarray(wih0_z, bf16),                  # (L, 4H)
        "b0": jnp.asarray(b0, f32),                           # (1, 4H)
        "wih_rest": jnp.asarray(jnp.stack(wih_rest), bf16),   # (L, H, 4H)
        "whh": jnp.asarray(jnp.stack(whh_all), bf16),         # (L, H, 4H)
        "b_rest": jnp.asarray(jnp.stack(b_rest), f32),        # (L, 1, 4H)
        "w1c": jnp.asarray(w1c, bf16), "w1h": jnp.asarray(w1h, bf16),
        "w1z": jnp.asarray(w1z, bf16),
        "b1": jnp.asarray(b1[None, :], f32),                  # (1, E)
        "w2": jnp.asarray(emb.T, bf16),                       # (E, V) tied weights
        "b2": jnp.asarray(b2[None, :], f32),                  # (1, V)
    }


# ----------------------------------------------------------------------------
# Forward pass (glue in JAX, hot loops in Pallas)
# ----------------------------------------------------------------------------
def decoder_forward(params, trg, z, encoded_src, hidden=None):
    T, B = trg.shape
    E = params["emb"].shape[1]
    H = params["whh"].shape[1]
    num_layers = params["whh"].shape[0]
    f32, bf16 = jnp.float32, jnp.bfloat16

    # pad the batch to a full sublane tile (multiple of 8)
    Bp = ((B + 7) // 8) * 8
    pad = Bp - B

    # embedding lookup (+ eval-mode dropout = identity)
    x = jnp.take(params["emb"], trg, axis=0)                         # (T, B, E)
    x = jnp.pad(x, ((0, 0), (0, pad), (0, 0)))                       # (T, Bp, E)
    z_p = jnp.pad(z, ((0, pad), (0, 0)))                             # (Bp, L)
    src_p = jnp.pad(encoded_src, ((0, 0), (0, pad), (0, 0)))         # (S, Bp, H)

    # Layer-0 gate pre-activations hoisted off the recurrence (fused 4H axis).
    # z contribution is time-invariant -> one (Bp,L)@(L,4H) matmul.
    x_flat = x.reshape(T * Bp, E).astype(bf16)
    gx_x = jnp.dot(x_flat, params["wih0_x"], preferred_element_type=f32)
    gx_z = jnp.dot(z_p.astype(bf16), params["wih0_z"],
                   preferred_element_type=f32)                       # (Bp, 4H)
    gx0 = (gx_x.reshape(T, Bp, 4 * H) + gx_z[None] + params["b0"]
           ).astype(bf16).reshape(T * Bp, 4 * H)

    if hidden is None:
        h0 = jnp.zeros((num_layers, Bp, H), f32)
        c0 = jnp.zeros((num_layers, Bp, H), f32)
    else:
        h0, c0 = hidden
        h0 = jnp.pad(h0, ((0, 0), (0, pad), (0, 0)))
        c0 = jnp.pad(c0, ((0, 0), (0, pad), (0, 0)))

    out_flat, h_n, c_n = fused_lstm(gx0, params["wih_rest"], params["whh"],
                                    params["b_rest"], h0, c0)
    out_seq = out_flat.reshape(T, Bp, H)                             # bf16

    logits_flat = attn_head(out_seq, src_p, z_p,
                            params["w1c"], params["w1h"], params["w1z"],
                            params["b1"], params["w2"], params["b2"])
    V = logits_flat.shape[-1]
    logp = jnp.transpose(logits_flat.reshape(Bp, T, V), (1, 0, 2))[:, :B, :]

    return logp, (h_n[:, :B, :], c_n[:, :B, :])


if __name__ == "__main__":
    vocab_size = 32
    embed_size = 16
    hidden_size = 32          # 4H = 128 -> one full MXU lane pass per step
    latent_size = 8
    num_layers = 2
    trg_len = 8
    batch = 4
    src_len = 6

    key = jax.random.PRNGKey(0)
    k_par, k_trg, k_z, k_src = jax.random.split(key, 4)

    params = init_params(k_par, vocab_size, embed_size, hidden_size,
                         latent_size, num_layers)

    trg = jax.random.randint(k_trg, (trg_len, batch), 0, vocab_size,
                             dtype=jnp.int32)
    z = jax.random.normal(k_z, (batch, latent_size), jnp.float32)
    encoded_src = jax.random.normal(k_src, (src_len, batch, hidden_size),
                                    jnp.float32)

    logp, (h_n, c_n) = decoder_forward(params, trg, z, encoded_src)
    jax.block_until_ready((logp, h_n, c_n))

    assert logp.shape == (trg_len, batch, vocab_size)
    assert h_n.shape == (num_layers, batch, hidden_size)
    assert c_n.shape == (num_layers, batch, hidden_size)
    assert bool(jnp.all(jnp.isfinite(logp)))
    # log_softmax rows must exponentiate-sum to ~1
    assert jnp.allclose(jnp.exp(logp).sum(-1), 1.0, atol=1e-3)

    print("KERNEL_OK")
</pallas_src>

<mosaic_0001>
module attributes {stable_mosaic.version = 11 : i64} {
  func.func @_lstm_kernel(%arg0: i32, %arg1: memref<64x128xbf16, #tpu.memory_space<vmem>>, %arg2: memref<1x32x128xbf16, #tpu.memory_space<vmem>>, %arg3: memref<1x32x128xbf16, #tpu.memory_space<vmem>>, %arg4: memref<1x1x128xf32, #tpu.memory_space<vmem>>, %arg5: memref<1x8x32xf32, #tpu.memory_space<vmem>>, %arg6: memref<1x8x32xf32, #tpu.memory_space<vmem>>, %arg7: memref<64x32xbf16, #tpu.memory_space<vmem>>, %arg8: memref<1x8x32xf32, #tpu.memory_space<vmem>>, %arg9: memref<1x8x32xf32, #tpu.memory_space<vmem>>, %arg10: memref<64x128xbf16, #tpu.memory_space<vmem>>) attributes {dimension_semantics = [#tpu.dimension_semantics<arbitrary>], iteration_bounds = array<i64: 2>, scalar_prefetch = 0 : i64, scratch_operands = 1 : i64, tpu.core_type = #tpu.core_type<tc>, window_params = [{pipeline_mode = #tpu.pipeline_mode<synchronous>, transform_indices = @transform_0, window_bounds = array<i64: 64, 128>}, {transform_indices = @transform_1, window_bounds = array<i64: 1, 32, 128>}, {transform_indices = @transform_2, window_bounds = array<i64: 1, 32, 128>}, {transform_indices = @transform_3, window_bounds = array<i64: 1, 1, 128>}, {transform_indices = @transform_4, window_bounds = array<i64: 1, 8, 32>}, {transform_indices = @transform_5, window_bounds = array<i64: 1, 8, 32>}, {pipeline_mode = #tpu.pipeline_mode<synchronous>, transform_indices = @transform_6, window_bounds = array<i64: 64, 32>}, {transform_indices = @transform_7, window_bounds = array<i64: 1, 8, 32>}, {transform_indices = @transform_8, window_bounds = array<i64: 1, 8, 32>}]} {
    %c0_i32 = arith.constant 0 : i32
    %0 = arith.cmpi eq, %arg0, %c0_i32 : i32
    %1 = arith.extui %0 : i1 to i32
    %c0_i32_0 = arith.constant 0 : i32
    %2 = arith.cmpi ne, %1, %c0_i32_0 : i32
    scf.if %2 {
      %c0_57 = arith.constant 0 : index
      %c0_58 = arith.constant 0 : index
      %224 = vector.load %arg1[%c0_57, %c0_58] : memref<64x128xbf16, #tpu.memory_space<vmem>>, vector<64x128xbf16>
      %c0_59 = arith.constant 0 : index
      %c0_60 = arith.constant 0 : index
      %225 = vector.load %arg10[%c0_59, %c0_60] : memref<64x128xbf16, #tpu.memory_space<vmem>>, vector<64x128xbf16>
      tpu.vector_store %arg10[%c0_59, %c0_60], %224 {strides = array<i32>} : memref<64x128xbf16, #tpu.memory_space<vmem>>, vector<64x128xbf16>,
    } else {
    }
    %c0_i32_1 = arith.constant 0 : i32
    %3 = arith.cmpi sgt, %arg0, %c0_i32_1 : i32
    %4 = arith.extui %3 : i1 to i32
    %c0_i32_2 = arith.constant 0 : i32
    %5 = arith.cmpi ne, %4, %c0_i32_2 : i32
    scf.if %5 {
      %c0_57 = arith.constant 0 : index
      %c0_58 = arith.constant 0 : index
      %224 = vector.load %arg7[%c0_57, %c0_58] : memref<64x32xbf16, #tpu.memory_space<vmem>>, vector<64x32xbf16>
      %c0_59 = arith.constant 0 : index
      %c0_60 = arith.constant 0 : index
      %c0_61 = arith.constant 0 : index
      %225 = vector.load %arg2[%c0_59, %c0_60, %c0_61] : memref<1x32x128xbf16, #tpu.memory_space<vmem>>, vector<1x32x128xbf16>
      %226 = vector.shape_cast %225 : vector<1x32x128xbf16> to vector<32x128xbf16>
      %cst_62 = arith.constant dense<0.000000e+00> : vector<64x128xf32>
      %227 = tpu.matmul %224, %226, %cst_62 {dimension_numbers = #tpu.dot_dimension_numbers<[1], [0], [0], [1], [0, 0, 1, 1], [], []>} : vector<64x32xbf16>, vector<32x128xbf16>, vector<64x128xf32> -> vector<64x128xf32>
      %c0_63 = arith.constant 0 : index
      %c0_64 = arith.constant 0 : index
      %c0_65 = arith.constant 0 : index
      %228 = vector.load %arg4[%c0_63, %c0_64, %c0_65] : memref<1x1x128xf32, #tpu.memory_space<vmem>>, vector<1x1x128xf32>
      %229 = vector.shape_cast %228 : vector<1x1x128xf32> to vector<1x128xf32>
      %230 = vector.broadcast %229 : vector<1x128xf32> to vector<64x128xf32>
      %231 = arith.addf %227, %230 : vector<64x128xf32>
      %232 = arith.truncf %231 : vector<64x128xf32> to vector<64x128xbf16>
      %c0_66 = arith.constant 0 : index
      %c0_67 = arith.constant 0 : index
      %233 = vector.load %arg10[%c0_66, %c0_67] : memref<64x128xbf16, #tpu.memory_space<vmem>>, vector<64x128xbf16>
      tpu.vector_store %arg10[%c0_66, %c0_67], %232 {strides = array<i32>} : memref<64x128xbf16, #tpu.memory_space<vmem>>, vector<64x128xbf16>,
    } else {
    }
    %c0 = arith.constant 0 : index
    %c0_3 = arith.constant 0 : index
    %c0_4 = arith.constant 0 : index
    %6 = vector.load %arg3[%c0, %c0_3, %c0_4] : memref<1x32x128xbf16, #tpu.memory_space<vmem>>, vector<1x32x128xbf16>
    %7 = vector.shape_cast %6 : vector<1x32x128xbf16> to vector<32x128xbf16>
    %8 = tpu.iota {dimensions = array<i32: 1>} : vector<1x128xi32>
    %c64_i32 = arith.constant 64 : i32
    %9 = vector.broadcast %c64_i32 : i32 to vector<1x128xi32>
    %10 = arith.cmpi sge, %8, %9 : vector<1x128xi32>
    %c96_i32 = arith.constant 96 : i32
    %11 = vector.broadcast %c96_i32 : i32 to vector<1x128xi32>
    %12 = arith.cmpi slt, %8, %11 : vector<1x128xi32>
    %13 = arith.andi %10, %12 : vector<1x128xi1>
    %c0_5 = arith.constant 0 : index
    %c0_6 = arith.constant 0 : index
    %c0_7 = arith.constant 0 : index
    %14 = vector.load %arg5[%c0_5, %c0_6, %c0_7] : memref<1x8x32xf32, #tpu.memory_space<vmem>>, vector<1x8x32xf32>
    %15 = vector.shape_cast %14 : vector<1x8x32xf32> to vector<8x32xf32>
    %c0_8 = arith.constant 0 : index
    %c0_9 = arith.constant 0 : index
    %c0_10 = arith.constant 0 : index
    %16 = vector.load %arg6[%c0_8, %c0_9, %c0_10] : memref<1x8x32xf32, #tpu.memory_space<vmem>>, vector<1x8x32xf32>
    %17 = vector.shape_cast %16 : vector<1x8x32xf32> to vector<8x32xf32>
    %c0_11 = arith.constant 0 : index
    %c0_12 = arith.constant 0 : index
    %18 = vector.load %arg10[%c0_11, %c0_12] : memref<64x128xbf16, #tpu.memory_space<vmem>>, vector<8x128xbf16>
    %19 = arith.extf %18 : vector<8x128xbf16> to vector<8x128xf32>
    %20 = arith.truncf %15 : vector<8x32xf32> to vector<8x32xbf16>
    %cst = arith.constant dense<0.000000e+00> : vector<8x128xf32>
    %21 = tpu.matmul %20, %7, %cst {dimension_numbers = #tpu.dot_dimension_numbers<[1], [0], [0], [1], [0, 0, 1, 1], [], []>} : vector<8x32xbf16>, vector<32x128xbf16>, vector<8x128xf32> -> vector<8x128xf32>
    %22 = arith.addf %19, %21 : vector<8x128xf32>
    %23 = math.tanh %22 : vector<8x128xf32>
    %24 = arith.negf %22 : vector<8x128xf32>
    %25 = math.exp %24 : vector<8x128xf32>
    %cst_13 = arith.constant 1.000000e+00 : f32
    %26 = vector.broadcast %cst_13 : f32 to vector<8x128xf32>
    %27 = arith.addf %26, %25 : vector<8x128xf32>
    %28 = arith.divf %26, %27 : vector<8x128xf32>
    %29 = vector.shape_cast %13 : vector<1x128xi1> to vector<1x128xi1>
    %30 = vector.broadcast %29 : vector<1x128xi1> to vector<8x128xi1>
    %31 = arith.select %30, %23, %28 : vector<8x128xi1>, vector<8x128xf32>
    %32 = vector.extract_strided_slice %31 {offsets = [0, 0], sizes = [8, 32], strides = [1, 1]} : vector<8x128xf32> to vector<8x32xf32>
    %33 = vector.extract_strided_slice %31 {offsets = [0, 32], sizes = [8, 32], strides = [1, 1]} : vector<8x128xf32> to vector<8x32xf32>
    %34 = vector.extract_strided_slice %31 {offsets = [0, 64], sizes = [8, 32], strides = [1, 1]} : vector<8x128xf32> to vector<8x32xf32>
    %35 = vector.extract_strided_slice %31 {offsets = [0, 96], sizes = [8, 32], strides = [1, 1]} : vector<8x128xf32> to vector<8x32xf32>
    %36 = arith.mulf %33, %17 : vector<8x32xf32>
    %37 = arith.mulf %32, %34 : vector<8x32xf32>
    %38 = arith.addf %36, %37 : vector<8x32xf32>
    %39 = math.tanh %38 : vector<8x32xf32>
    %40 = arith.mulf %35, %39 : vector<8x32xf32>
    %41 = arith.truncf %40 : vector<8x32xf32> to vector<8x32xbf16>
    %c0_14 = arith.constant 0 : index
    %c0_15 = arith.constant 0 : index
    %42 = vector.load %arg7[%c0_14, %c0_15] : memref<64x32xbf16, #tpu.memory_space<vmem>>, vector<8x32xbf16>
    tpu.vector_store %arg7[%c0_14, %c0_15], %41 {strides = array<i32>} : memref<64x32xbf16, #tpu.memory_space<vmem>>, vector<8x32xbf16>,
    %c8 = arith.constant 8 : index
    %c0_16 = arith.constant 0 : index
    %43 = vector.load %arg10[%c8, %c0_16] : memref<64x128xbf16, #tpu.memory_space<vmem>>, vector<8x128xbf16>
    %44 = arith.extf %43 : vector<8x128xbf16> to vector<8x128xf32>
    %45 = arith.truncf %40 : vector<8x32xf32> to vector<8x32xbf16>
    %cst_17 = arith.constant dense<0.000000e+00> : vector<8x128xf32>
    %46 = tpu.matmul %45, %7, %cst_17 {dimension_numbers = #tpu.dot_dimension_numbers<[1], [0], [0], [1], [0, 0, 1, 1], [], []>} : vector<8x32xbf16>, vector<32x128xbf16>, vector<8x128xf32> -> vector<8x128xf32>
    %47 = arith.addf %44, %46 : vector<8x128xf32>
    %48 = math.tanh %47 : vector<8x128xf32>
    %49 = arith.negf %47 : vector<8x128xf32>
    %50 = math.exp %49 : vector<8x128xf32>
    %cst_18 = arith.constant 1.000000e+00 : f32
    %51 = vector.broadcast %cst_18 : f32 to vector<8x128xf32>
    %52 = arith.addf %51, %50 : vector<8x128xf32>
    %53 = arith.divf %51, %52 : vector<8x128xf32>
    %54 = vector.shape_cast %13 : vector<1x128xi1> to vector<1x128xi1>
    %55 = vector.broadcast %54 : vector<1x128xi1> to vector<8x128xi1>
    %56 = arith.select %55, %48, %53 : vector<8x128xi1>, vector<8x128xf32>
    %57 = vector.extract_strided_slice %56 {offsets = [0, 0], sizes = [8, 32], strides = [1, 1]} : vector<8x128xf32> to vector<8x32xf32>
    %58 = vector.extract_strided_slice %56 {offsets = [0, 32], sizes = [8, 32], strides = [1, 1]} : vector<8x128xf32> to vector<8x32xf32>
    %59 = vector.extract_strided_slice %56 {offsets = [0, 64], sizes = [8, 32], strides = [1, 1]} : vector<8x128xf32> to vector<8x32xf32>
    %60 = vector.extract_strided_slice %56 {offsets = [0, 96], sizes = [8, 32], strides = [1, 1]} : vector<8x128xf32> to vector<8x32xf32>
    %61 = arith.mulf %58, %38 : vector<8x32xf32>
    %62 = arith.mulf %57, %59 : vector<8x32xf32>
    %63 = arith.addf %61, %62 : vector<8x32xf32>
    %64 = math.tanh %63 : vector<8x32xf32>
    %65 = arith.mulf %60, %64 : vector<8x32xf32>
    %66 = arith.truncf %65 : vector<8x32xf32> to vector<8x32xbf16>
    %c8_19 = arith.constant 8 : index
    %c0_20 = arith.constant 0 : index
    %67 = vector.load %arg7[%c8_19, %c0_20] : memref<64x32xbf16, #tpu.memory_space<vmem>>, vector<8x32xbf16>
    tpu.vector_store %arg7[%c8_19, %c0_20], %66 {strides = array<i32>} : memref<64x32xbf16, #tpu.memory_space<vmem>>, vector<8x32xbf16>,
    %c16 = arith.constant 16 : index
    %c0_21 = arith.constant 0 : index
    %68 = vector.load %arg10[%c16, %c0_21] : memref<64x128xbf16, #tpu.memory_space<vmem>>, vector<8x128xbf16>
    %69 = arith.extf %68 : vector<8x128xbf16> to vector<8x128xf32>
    %70 = arith.truncf %65 : vector<8x32xf32> to vector<8x32xbf16>
    %cst_22 = arith.constant dense<0.000000e+00> : vector<8x128xf32>
    %71 = tpu.matmul %70, %7, %cst_22 {dimension_numbers = #tpu.dot_dimension_numbers<[1], [0], [0], [1], [0, 0, 1, 1], [], []>} : vector<8x32xbf16>, vector<32x128xbf16>, vector<8x128xf32> -> vector<8x128xf32>
    %72 = arith.addf %69, %71 : vector<8x128xf32>
    %73 = math.tanh %72 : vector<8x128xf32>
    %74 = arith.negf %72 : vector<8x128xf32>
    %75 = math.exp %74 : vector<8x128xf32>
    %cst_23 = arith.constant 1.000000e+00 : f32
    %76 = vector.broadcast %cst_23 : f32 to vector<8x128xf32>
    %77 = arith.addf %76, %75 : vector<8x128xf32>
    %78 = arith.divf %76, %77 : vector<8x128xf32>
    %79 = vector.shape_cast %13 : vector<1x128xi1> to vector<1x128xi1>
    %80 = vector.broadcast %79 : vector<1x128xi1> to vector<8x128xi1>
    %81 = arith.select %80, %73, %78 : vector<8x128xi1>, vector<8x128xf32>
    %82 = vector.extract_strided_slice %81 {offsets = [0, 0], sizes = [8, 32], strides = [1, 1]} : vector<8x128xf32> to vector<8x32xf32>
    %83 = vector.extract_strided_slice %81 {offsets = [0, 32], sizes = [8, 32], strides = [1, 1]} : vector<8x128xf32> to vector<8x32xf32>
    %84 = vector.extract_strided_slice %81 {offsets = [0, 64], sizes = [8, 32], strides = [1, 1]} : vector<8x128xf32> to vector<8x32xf32>
    %85 = vector.extract_strided_slice %81 {offsets = [0, 96], sizes = [8, 32], strides = [1, 1]} : vector<8x128xf32> to vector<8x32xf32>
    %86 = arith.mulf %83, %63 : vector<8x32xf32>
    %87 = arith.mulf %82, %84 : vector<8x32xf32>
    %88 = arith.addf %86, %87 : vector<8x32xf32>
    %89 = math.tanh %88 : vector<8x32xf32>
    %90 = arith.mulf %85, %89 : vector<8x32xf32>
    %91 = arith.truncf %90 : vector<8x32xf32> to vector<8x32xbf16>
    %c16_24 = arith.constant 16 : index
    %c0_25 = arith.constant 0 : index
    %92 = vector.load %arg7[%c16_24, %c0_25] : memref<64x32xbf16, #tpu.memory_space<vmem>>, vector<8x32xbf16>
    tpu.vector_store %arg7[%c16_24, %c0_25], %91 {strides = array<i32>} : memref<64x32xbf16, #tpu.memory_space<vmem>>, vector<8x32xbf16>,
    %c24 = arith.constant 24 : index
    %c0_26 = arith.constant 0 : index
    %93 = vector.load %arg10[%c24, %c0_26] : memref<64x128xbf16, #tpu.memory_space<vmem>>, vector<8x128xbf16>
    %94 = arith.extf %93 : vector<8x128xbf16> to vector<8x128xf32>
    %95 = arith.truncf %90 : vector<8x32xf32> to vector<8x32xbf16>
    %cst_27 = arith.constant dense<0.000000e+00> : vector<8x128xf32>
    %96 = tpu.matmul %95, %7, %cst_27 {dimension_numbers = #tpu.dot_dimension_numbers<[1], [0], [0], [1], [0, 0, 1, 1], [], []>} : vector<8x32xbf16>, vector<32x128xbf16>, vector<8x128xf32> -> vector<8x128xf32>
    %97 = arith.addf %94, %96 : vector<8x128xf32>
    %98 = math.tanh %97 : vector<8x128xf32>
    %99 = arith.negf %97 : vector<8x128xf32>
    %100 = math.exp %99 : vector<8x128xf32>
    %cst_28 = arith.constant 1.000000e+00 : f32
    %101 = vector.broadcast %cst_28 : f32 to vector<8x128xf32>
    %102 = arith.addf %101, %100 : vector<8x128xf32>
    %103 = arith.divf %101, %102 : vector<8x128xf32>
    %104 = vector.shape_cast %13 : vector<1x128xi1> to vector<1x128xi1>
    %105 = vector.broadcast %104 : vector<1x128xi1> to vector<8x128xi1>
    %106 = arith.select %105, %98, %103 : vector<8x128xi1>, vector<8x128xf32>
    %107 = vector.extract_strided_slice %106 {offsets = [0, 0], sizes = [8, 32], strides = [1, 1]} : vector<8x128xf32> to vector<8x32xf32>
    %108 = vector.extract_strided_slice %106 {offsets = [0, 32], sizes = [8, 32], strides = [1, 1]} : vector<8x128xf32> to vector<8x32xf32>
    %109 = vector.extract_strided_slice %106 {offsets = [0, 64], sizes = [8, 32], strides = [1, 1]} : vector<8x128xf32> to vector<8x32xf32>
    %110 = vector.extract_strided_slice %106 {offsets = [0, 96], sizes = [8, 32], strides = [1, 1]} : vector<8x128xf32> to vector<8x32xf32>
    %111 = arith.mulf %108, %88 : vector<8x32xf32>
    %112 = arith.mulf %107, %109 : vector<8x32xf32>
    %113 = arith.addf %111, %112 : vector<8x32xf32>
    %114 = math.tanh %113 : vector<8x32xf32>
    %115 = arith.mulf %110, %114 : vector<8x32xf32>
    %116 = arith.truncf %115 : vector<8x32xf32> to vector<8x32xbf16>
    %c24_29 = arith.constant 24 : index
    %c0_30 = arith.constant 0 : index
    %117 = vector.load %arg7[%c24_29, %c0_30] : memref<64x32xbf16, #tpu.memory_space<vmem>>, vector<8x32xbf16>
    tpu.vector_store %arg7[%c24_29, %c0_30], %116 {strides = array<i32>} : memref<64x32xbf16, #tpu.memory_space<vmem>>, vector<8x32xbf16>,
    %c32 = arith.constant 32 : index
    %c0_31 = arith.constant 0 : index
    %118 = vector.load %arg10[%c32, %c0_31] : memref<64x128xbf16, #tpu.memory_space<vmem>>, vector<8x128xbf16>
    %119 = arith.extf %118 : vector<8x128xbf16> to vector<8x128xf32>
    %120 = arith.truncf %115 : vector<8x32xf32> to vector<8x32xbf16>
    %cst_32 = arith.constant dense<0.000000e+00> : vector<8x128xf32>
    %121 = tpu.matmul %120, %7, %cst_32 {dimension_numbers = #tpu.dot_dimension_numbers<[1], [0], [0], [1], [0, 0, 1, 1], [], []>} : vector<8x32xbf16>, vector<32x128xbf16>, vector<8x128xf32> -> vector<8x128xf32>
    %122 = arith.addf %119, %121 : vector<8x128xf32>
    %123 = math.tanh %122 : vector<8x128xf32>
    %124 = arith.negf %122 : vector<8x128xf32>
    %125 = math.exp %124 : vector<8x128xf32>
    %cst_33 = arith.constant 1.000000e+00 : f32
    %126 = vector.broadcast %cst_33 : f32 to vector<8x128xf32>
    %127 = arith.addf %126, %125 : vector<8x128xf32>
    %128 = arith.divf %126, %127 : vector<8x128xf32>
    %129 = vector.shape_cast %13 : vector<1x128xi1> to vector<1x128xi1>
    %130 = vector.broadcast %129 : vector<1x128xi1> to vector<8x128xi1>
    %131 = arith.select %130, %123, %128 : vector<8x128xi1>, vector<8x128xf32>
    %132 = vector.extract_strided_slice %131 {offsets = [0, 0], sizes = [8, 32], strides = [1, 1]} : vector<8x128xf32> to vector<8x32xf32>
    %133 = vector.extract_strided_slice %131 {offsets = [0, 32], sizes = [8, 32], strides = [1, 1]} : vector<8x128xf32> to vector<8x32xf32>
    %134 = vector.extract_strided_slice %131 {offsets = [0, 64], sizes = [8, 32], strides = [1, 1]} : vector<8x128xf32> to vector<8x32xf32>
    %135 = vector.extract_strided_slice %131 {offsets = [0, 96], sizes = [8, 32], strides = [1, 1]} : vector<8x128xf32> to vector<8x32xf32>
    %136 = arith.mulf %133, %113 : vector<8x32xf32>
    %137 = arith.mulf %132, %134 : vector<8x32xf32>
    %138 = arith.addf %136, %137 : vector<8x32xf32>
    %139 = math.tanh %138 : vector<8x32xf32>
    %140 = arith.mulf %135, %139 : vector<8x32xf32>
    %141 = arith.truncf %140 : vector<8x32xf32> to vector<8x32xbf16>
    %c32_34 = arith.constant 32 : index
    %c0_35 = arith.constant 0 : index
    %142 = vector.load %arg7[%c32_34, %c0_35] : memref<64x32xbf16, #tpu.memory_space<vmem>>, vector<8x32xbf16>
    tpu.vector_store %arg7[%c32_34, %c0_35], %141 {strides = array<i32>} : memref<64x32xbf16, #tpu.memory_space<vmem>>, vector<8x32xbf16>,
    %c40 = arith.constant 40 : index
    %c0_36 = arith.constant 0 : index
    %143 = vector.load %arg10[%c40, %c0_36] : memref<64x128xbf16, #tpu.memory_space<vmem>>, vector<8x128xbf16>
    %144 = arith.extf %143 : vector<8x128xbf16> to vector<8x128xf32>
    %145 = arith.truncf %140 : vector<8x32xf32> to vector<8x32xbf16>
    %cst_37 = arith.constant dense<0.000000e+00> : vector<8x128xf32>
    %146 = tpu.matmul %145, %7, %cst_37 {dimension_numbers = #tpu.dot_dimension_numbers<[1], [0], [0], [1], [0, 0, 1, 1], [], []>} : vector<8x32xbf16>, vector<32x128xbf16>, vector<8x128xf32> -> vector<8x128xf32>
    %147 = arith.addf %144, %146 : vector<8x128xf32>
    %148 = math.tanh %147 : vector<8x128xf32>
    %149 = arith.negf %147 : vector<8x128xf32>
    %150 = math.exp %149 : vector<8x128xf32>
    %cst_38 = arith.constant 1.000000e+00 : f32
    %151 = vector.broadcast %cst_38 : f32 to vector<8x128xf32>
    %152 = arith.addf %151, %150 : vector<8x128xf32>
    %153 = arith.divf %151, %152 : vector<8x128xf32>
    %154 = vector.shape_cast %13 : vector<1x128xi1> to vector<1x128xi1>
    %155 = vector.broadcast %154 : vector<1x128xi1> to vector<8x128xi1>
    %156 = arith.select %155, %148, %153 : vector<8x128xi1>, vector<8x128xf32>
    %157 = vector.extract_strided_slice %156 {offsets = [0, 0], sizes = [8, 32], strides = [1, 1]} : vector<8x128xf32> to vector<8x32xf32>
    %158 = vector.extract_strided_slice %156 {offsets = [0, 32], sizes = [8, 32], strides = [1, 1]} : vector<8x128xf32> to vector<8x32xf32>
    %159 = vector.extract_strided_slice %156 {offsets = [0, 64], sizes = [8, 32], strides = [1, 1]} : vector<8x128xf32> to vector<8x32xf32>
    %160 = vector.extract_strided_slice %156 {offsets = [0, 96], sizes = [8, 32], strides = [1, 1]} : vector<8x128xf32> to vector<8x32xf32>
    %161 = arith.mulf %158, %138 : vector<8x32xf32>
    %162 = arith.mulf %157, %159 : vector<8x32xf32>
    %163 = arith.addf %161, %162 : vector<8x32xf32>
    %164 = math.tanh %163 : vector<8x32xf32>
    %165 = arith.mulf %160, %164 : vector<8x32xf32>
    %166 = arith.truncf %165 : vector<8x32xf32> to vector<8x32xbf16>
    %c40_39 = arith.constant 40 : index
    %c0_40 = arith.constant 0 : index
    %167 = vector.load %arg7[%c40_39, %c0_40] : memref<64x32xbf16, #tpu.memory_space<vmem>>, vector<8x32xbf16>
    tpu.vector_store %arg7[%c40_39, %c0_40], %166 {strides = array<i32>} : memref<64x32xbf16, #tpu.memory_space<vmem>>, vector<8x32xbf16>,
    %c48 = arith.constant 48 : index
    %c0_41 = arith.constant 0 : index
    %168 = vector.load %arg10[%c48, %c0_41] : memref<64x128xbf16, #tpu.memory_space<vmem>>, vector<8x128xbf16>
    %169 = arith.extf %168 : vector<8x128xbf16> to vector<8x128xf32>
    %170 = arith.truncf %165 : vector<8x32xf32> to vector<8x32xbf16>
    %cst_42 = arith.constant dense<0.000000e+00> : vector<8x128xf32>
    %171 = tpu.matmul %170, %7, %cst_42 {dimension_numbers = #tpu.dot_dimension_numbers<[1], [0], [0], [1], [0, 0, 1, 1], [], []>} : vector<8x32xbf16>, vector<32x128xbf16>, vector<8x128xf32> -> vector<8x128xf32>
    %172 = arith.addf %169, %171 : vector<8x128xf32>
    %173 = math.tanh %172 : vector<8x128xf32>
    %174 = arith.negf %172 : vector<8x128xf32>
    %175 = math.exp %174 : vector<8x128xf32>
    %cst_43 = arith.constant 1.000000e+00 : f32
    %176 = vector.broadcast %cst_43 : f32 to vector<8x128xf32>
    %177 = arith.addf %176, %175 : vector<8x128xf32>
    %178 = arith.divf %176, %177 : vector<8x128xf32>
    %179 = vector.shape_cast %13 : vector<1x128xi1> to vector<1x128xi1>
    %180 = vector.broadcast %179 : vector<1x128xi1> to vector<8x128xi1>
    %181 = arith.select %180, %173, %178 : vector<8x128xi1>, vector<8x128xf32>
    %182 = vector.extract_strided_slice %181 {offsets = [0, 0], sizes = [8, 32], strides = [1, 1]} : vector<8x128xf32> to vector<8x32xf32>
    %183 = vector.extract_strided_slice %181 {offsets = [0, 32], sizes = [8, 32], strides = [1, 1]} : vector<8x128xf32> to vector<8x32xf32>
    %184 = vector.extract_strided_slice %181 {offsets = [0, 64], sizes = [8, 32], strides = [1, 1]} : vector<8x128xf32> to vector<8x32xf32>
    %185 = vector.extract_strided_slice %181 {offsets = [0, 96], sizes = [8, 32], strides = [1, 1]} : vector<8x128xf32> to vector<8x32xf32>
    %186 = arith.mulf %183, %163 : vector<8x32xf32>
    %187 = arith.mulf %182, %184 : vector<8x32xf32>
    %188 = arith.addf %186, %187 : vector<8x32xf32>
    %189 = math.tanh %188 : vector<8x32xf32>
    %190 = arith.mulf %185, %189 : vector<8x32xf32>
    %191 = arith.truncf %190 : vector<8x32xf32> to vector<8x32xbf16>
    %c48_44 = arith.constant 48 : index
    %c0_45 = arith.constant 0 : index
    %192 = vector.load %arg7[%c48_44, %c0_45] : memref<64x32xbf16, #tpu.memory_space<vmem>>, vector<8x32xbf16>
    tpu.vector_store %arg7[%c48_44, %c0_45], %191 {strides = array<i32>} : memref<64x32xbf16, #tpu.memory_space<vmem>>, vector<8x32xbf16>,
    %c56 = arith.constant 56 : index
    %c0_46 = arith.constant 0 : index
    %193 = vector.load %arg10[%c56, %c0_46] : memref<64x128xbf16, #tpu.memory_space<vmem>>, vector<8x128xbf16>
    %194 = arith.extf %193 : vector<8x128xbf16> to vector<8x128xf32>
    %195 = arith.truncf %190 : vector<8x32xf32> to vector<8x32xbf16>
    %cst_47 = arith.constant dense<0.000000e+00> : vector<8x128xf32>
    %196 = tpu.matmul %195, %7, %cst_47 {dimension_numbers = #tpu.dot_dimension_numbers<[1], [0], [0], [1], [0, 0, 1, 1], [], []>} : vector<8x32xbf16>, vector<32x128xbf16>, vector<8x128xf32> -> vector<8x128xf32>
    %197 = arith.addf %194, %196 : vector<8x128xf32>
    %198 = math.tanh %197 : vector<8x128xf32>
    %199 = arith.negf %197 : vector<8x128xf32>
    %200 = math.exp %199 : vector<8x128xf32>
    %cst_48 = arith.constant 1.000000e+00 : f32
    %201 = vector.broadcast %cst_48 : f32 to vector<8x128xf32>
    %202 = arith.addf %201, %200 : vector<8x128xf32>
    %203 = arith.divf %201, %202 : vector<8x128xf32>
    %204 = vector.shape_cast %13 : vector<1x128xi1> to vector<1x128xi1>
    %205 = vector.broadcast %204 : vector<1x128xi1> to vector<8x128xi1>
    %206 = arith.select %205, %198, %203 : vector<8x128xi1>, vector<8x128xf32>
    %207 = vector.extract_strided_slice %206 {offsets = [0, 0], sizes = [8, 32], strides = [1, 1]} : vector<8x128xf32> to vector<8x32xf32>
    %208 = vector.extract_strided_slice %206 {offsets = [0, 32], sizes = [8, 32], strides = [1, 1]} : vector<8x128xf32> to vector<8x32xf32>
    %209 = vector.extract_strided_slice %206 {offsets = [0, 64], sizes = [8, 32], strides = [1, 1]} : vector<8x128xf32> to vector<8x32xf32>
    %210 = vector.extract_strided_slice %206 {offsets = [0, 96], sizes = [8, 32], strides = [1, 1]} : vector<8x128xf32> to vector<8x32xf32>
    %211 = arith.mulf %208, %188 : vector<8x32xf32>
    %212 = arith.mulf %207, %209 : vector<8x32xf32>
    %213 = arith.addf %211, %212 : vector<8x32xf32>
    %214 = math.tanh %213 : vector<8x32xf32>
    %215 = arith.mulf %210, %214 : vector<8x32xf32>
    %216 = arith.truncf %215 : vector<8x32xf32> to vector<8x32xbf16>
    %c56_49 = arith.constant 56 : index
    %c0_50 = arith.constant 0 : index
    %217 = vector.load %arg7[%c56_49, %c0_50] : memref<64x32xbf16, #tpu.memory_space<vmem>>, vector<8x32xbf16>
    tpu.vector_store %arg7[%c56_49, %c0_50], %216 {strides = array<i32>} : memref<64x32xbf16, #tpu.memory_space<vmem>>, vector<8x32xbf16>,
    %c0_51 = arith.constant 0 : index
    %c0_52 = arith.constant 0 : index
    %c0_53 = arith.constant 0 : index
    %218 = vector.load %arg8[%c0_51, %c0_52, %c0_53] : memref<1x8x32xf32, #tpu.memory_space<vmem>>, vector<1x8x32xf32>
    %219 = vector.shape_cast %218 : vector<1x8x32xf32> to vector<8x32xf32>
    %220 = vector.shape_cast %215 : vector<8x32xf32> to vector<1x8x32xf32>
    tpu.vector_store %arg8[%c0_51, %c0_52, %c0_53], %220 {strides = array<i32>} : memref<1x8x32xf32, #tpu.memory_space<vmem>>, vector<1x8x32xf32>,
    %c0_54 = arith.constant 0 : index
    %c0_55 = arith.constant 0 : index
    %c0_56 = arith.constant 0 : index
    %221 = vector.load %arg9[%c0_54, %c0_55, %c0_56] : memref<1x8x32xf32, #tpu.memory_space<vmem>>, vector<1x8x32xf32>
    %222 = vector.shape_cast %221 : vector<1x8x32xf32> to vector<8x32xf32>
    %223 = vector.shape_cast %213 : vector<8x32xf32> to vector<1x8x32xf32>
    tpu.vector_store %arg9[%c0_54, %c0_55, %c0_56], %223 {strides = array<i32>} : memref<1x8x32xf32, #tpu.memory_space<vmem>>, vector<1x8x32xf32>,
    return
  }
  func.func @transform_0(%arg0: i32) -> (i32, i32) {
    %c0_i32 = arith.constant 0 : i32
    %c0_i32_0 = arith.constant 0 : i32
    %c0_i32_1 = arith.constant 0 : i32
    return %c0_i32, %c0_i32_0 : i32, i32
  }
  func.func @transform_1(%arg0: i32) -> (i32, i32, i32) {
    %c0_i32 = arith.constant 0 : i32
    %c0_i32_0 = arith.constant 0 : i32
    %c0_i32_1 = arith.constant 0 : i32
    return %arg0, %c0_i32, %c0_i32_0 : i32, i32, i32
  }
  func.func @transform_2(%arg0: i32) -> (i32, i32, i32) {
    %c0_i32 = arith.constant 0 : i32
    %c0_i32_0 = arith.constant 0 : i32
    %c0_i32_1 = arith.constant 0 : i32
    return %arg0, %c0_i32, %c0_i32_0 : i32, i32, i32
  }
  func.func @transform_3(%arg0: i32) -> (i32, i32, i32) {
    %c0_i32 = arith.constant 0 : i32
    %c0_i32_0 = arith.constant 0 : i32
    %c0_i32_1 = arith.constant 0 : i32
    return %arg0, %c0_i32, %c0_i32_0 : i32, i32, i32
  }
  func.func @transform_4(%arg0: i32) -> (i32, i32, i32) {
    %c0_i32 = arith.constant 0 : i32
    %c0_i32_0 = arith.constant 0 : i32
    %c0_i32_1 = arith.constant 0 : i32
    return %arg0, %c0_i32, %c0_i32_0 : i32, i32, i32
  }
  func.func @transform_5(%arg0: i32) -> (i32, i32, i32) {
    %c0_i32 = arith.constant 0 : i32
    %c0_i32_0 = arith.constant 0 : i32
    %c0_i32_1 = arith.constant 0 : i32
    return %arg0, %c0_i32, %c0_i32_0 : i32, i32, i32
  }
  func.func @transform_6(%arg0: i32) -> (i32, i32) {
    %c0_i32 = arith.constant 0 : i32
    %c0_i32_0 = arith.constant 0 : i32
    %c0_i32_1 = arith.constant 0 : i32
    return %c0_i32, %c0_i32_0 : i32, i32
  }
  func.func @transform_7(%arg0: i32) -> (i32, i32, i32) {
    %c0_i32 = arith.constant 0 : i32
    %c0_i32_0 = arith.constant 0 : i32
    %c0_i32_1 = arith.constant 0 : i32
    return %arg0, %c0_i32, %c0_i32_0 : i32, i32, i32
  }
  func.func @transform_8(%arg0: i32) -> (i32, i32, i32) {
    %c0_i32 = arith.constant 0 : i32
    %c0_i32_0 = arith.constant 0 : i32
    %c0_i32_1 = arith.constant 0 : i32
    return %arg0, %c0_i32, %c0_i32_0 : i32, i32, i32
  }
}

</mosaic_0001>

<bundles_post_ra>
// kernel: tpu_custom_call.1
= control target key start
LH: loop header
LB: loop body
LE: loop exit
PB: predicated region body
PF: predicated region fallthrough
CT: control target
= control target key end

     0   :  { %s2750_s0 = inlined_call_operand.hbm [shape: bf16[64,128], index: 0, kind: input, shape index: {}]   ;;  %s2751_s1 = inlined_call_operand.hbm [shape: bf16[2,32,128], index: 1, kind: input, shape index: {}]   ;;  %s2752_s2 = inlined_call_operand.hbm [shape: bf16[2,32,128], index: 2, kind: input, shape index: {}]   ;;  %s2753_s3 = inlined_call_operand.vmem [shape: f32[2,1,128], index: 3, kind: input, shape index: {}]   ;;  %s2754_s4 = inlined_call_operand.hbm [shape: f32[2,8,32], index: 4, kind: input, shape index: {}]   ;;  %s2755_s5 = inlined_call_operand.vmem [shape: f32[2,8,32], index: 5, kind: input, shape index: {}]   ;;  %s2756_s6 = inlined_call_operand.vmem [shape: bf16[64,32], index: 6, kind: output, shape index: {0}]   ;;  %s2757_s7 = inlined_call_operand.hbm [shape: f32[2,8,32], index: 7, kind: output, shape index: {1}]   ;;  %s2758_s8 = inlined_call_operand.hbm [shape: f32[2,8,32], index: 8, kind: output, shape index: {2}]  }
   0x1   :  { %2778 = sst [smem:[#allocation24_spill]] %s2751_s1 }
   0x2   :  { %2779 = sst [smem:[#allocation25_spill]] %s2752_s2 }
   0x3   :  { %2780 = sst [smem:[#allocation26_spill]] %s2757_s7 }
   0x4   :  { %14 = vsyncpa [#allocation4], 0 }
   0x5   :  { %15 = vsyncpa [#allocation7], 0 }
   0x6   :  { %17 = vsyncpa [#allocation7 + $0x1], 0 }
   0x7   :  { %18 = vsyncpa [#allocation10], 0 }
   0x8   :  { %20 = vsyncpa [#allocation10 + $0x1], 0 }
   0x9   :  { %21 = vsyncpa [#allocation5], 0 }
   0xa   :  { %23 = vsyncpa [#allocation5 + $0x1], 0 }
   0xb   :  { %24 = vsyncpa [#allocation13], 0 }
   0xc   :  { %26 = vsyncpa [#allocation13 + $0x1], 0  ;;  %s2178_s27 = smov 0   ;;  %s2180_s28 = smov 0  }
   0xd   :  { %s2182_s29 = smov 0   ;;  %s2184_s30 = smov 0  }
   0xe LB: > { %2781 = sst [smem:[#allocation19_spill]] %s2106_s27  ;;  %s2199_s9 = sadd.s32 1, %s2118_s30   ;;  %s2118_s30 = sphi %s2184_s30, %s2816_s30   ;;  %s2114_s29 = sphi %s2182_s29, %s2818_s29   ;;  %s2110_s28 = sphi %s2180_s28, %s2820_s28   ;;  %s2106_s27 = sphi %s2178_s27, %s2819_s27  }
   0xf   : > { %2782 = sst [smem:[#allocation20_spill]] %s2114_s29  ;;  %s60_s10 = sadd.s32 1, %s2114_s29 }
  0x10   : > { %2783 = sst [smem:[#allocation21_spill]] %s2199_s9  ;;  %s57_s11 = ssub.s32 %s2118_s30, %s2199_s9 }
  0x11   : > { %p2759_p0 = scmp.ne.s32.totalorder %s2114_s29, %s2110_s28  ;;  %p58_p1 = scmp.eq.s32.totalorder %s57_s11, 0 }
  0x12   : > { %p68_p2 = scmp.eq.s32.totalorder %s2118_s30, 0  ;;  %p1775_p5 = scmp.lt.s32.totalorder %s2118_s30, 2 }
  0x13   : > { %s2208_s12 = scalar_select %p58_p1, %s2114_s29, %s60_s10  }
  0x14   : > { %p69_p3 = por %p68_p2, %p2759_p0  ;;  %s287_s13 = sand.u32 1, %s2118_s30  }
  0x15   : > { %2784 = sst [smem:[#allocation22_spill]] %s2208_s12  ;;  %s2217_s14 = sand.u32 1, %s2114_s29  }
  0x16   : > { %s1554_s15 = sshll.u32 %s2217_s14, 4  ;;  %s1619_s16 = sshll.u32 %s2118_s30, 8 }
  0x17   : > { %s2785_s1 = sld [smem:[#allocation24_spill]]  ;;  %s291_s20 = scalar_lea.vmem [#allocation6], %s1554_s15 }
  0x18   : > { %s298_s21 = sshll.u32 %s291_s20, 4  ;;  %p2228_p6 = pnand %p1775_p5, %p69_p3  ;;  %s2232_s21 = int_to_ptr.vmem [resolvable:$true] %s298_s21 }
  0x19   : > { %s2787_s2 = sld [smem:[#allocation25_spill]]  ;;  %s2239_s26 = scalar_lea.sflag [#allocation7], %s287_s13 }
  0x1a   : > { %s2786_s22 = scalar_select %p2228_p6, 1, 0 }
  0x1b   : > { %p2245_p8 = pneg %p2228_p6 }
  0x1d   : > { %s2224_s19 = scalar_lea.hbm %s2785_s1, %s1619_s16  ;;  %s1899_s20 = scalar_lea.hbm %s2785_s1, 512 }
  0x1e   : > { %s1894_s10 = scalar_lea.hbm %s2224_s19, 256  ;;  %p1900_p11 = scmp.lt.u32.totalorder %s2224_s19, %s2785_s1 }
  0x1f   : > { %s2237_s25 = scalar_lea.hbm %s2787_s2, %s1619_s16  ;;  %p1895_p7 = scmp.ne.s32.totalorder %s2224_s19, %s1894_s10 }
  0x20   : > { %s2788_s11 = scalar_select %p2245_p8, 1, 0 }
  0x21   : > { %p1897_p9 = pnand %p2245_p8, %p1895_p7  ;;  %p1901_p12 = scmp.lt.u32.totalorder %s1899_s20, %s1894_s10 }
  0x22   : > { %p1903_p1 = scmp.lt.u32.totalorder %s1894_s10, %s2224_s19 }
  0x23   : > { %p1898_p10 = pneg %p1897_p9  ;;  %p1902_p13 = por %p1901_p12, %p1900_p11 }
  0x25   : > { %p1904_p2 = por %p1903_p1, %p1902_p13 }
  0x27   : > { %p1905_p3 = pnand %p1904_p2, %p1898_p10 }
  0x29   : > { %1908 = shalt.err (!%p1905_p3)
}
  0x2a   : > { %s1909_s13 = scalar_lea.vmem %s2232_s21, 256  ;;  %s2120_s24 = smov [#allocation6]  }
  0x2b   : > { %p1910_p5 = scmp.ne.s32.totalorder %s2232_s21, %s1909_s13  ;;  %s1914_s17 = sshll.u32 %s2120_s24, 4  ;;  %s1915_s17 = int_to_ptr.vmem [resolvable:$false] %s1914_s17 }
  0x2c   : > { %s1916_s18 = scalar_lea.vmem %s1915_s17, 512  ;;  %p1917_p4 = scmp.lt.s32.totalorder %s2232_s21, %s1915_s17 }
  0x2d   : > { %p1912_p7 = pnand %p1910_p5, %p2245_p8  ;;  %p1918_p0 = scmp.lt.s32.totalorder %s1916_s18, %s1909_s13 }
  0x2f   : > { %p1913_p9 = pneg %p1912_p7  ;;  %p1919_p11 = por %p1918_p0, %p1917_p4 }
  0x31   : > { %p1920_p12 = pnand %p1919_p11, %p1913_p9 }
  0x33   : > { %1923 = shalt.err (!%p1920_p12)
}
  0x34   : > { %s2760_s10 = smov 64   ;;  %s2762_s20 = smov 4  }
  0x35   : > { %1760 = dma.hbm_to_vmem [thread:$0]  (!%p2228_p6), %s2224_s19, 256, %s2232_s21, %s2239_s26, %s2760_s10, %s2760_s10, %s2762_s20  }
  0x36   : > { %s312_s23 = scalar_lea.vmem [#allocation8], %s1554_s15  ;;  %s2277_s13 = sadd.s32 4294967295, %s2118_s30  }
  0x37   : > { %s319_s16 = sshll.u32 %s312_s23, 4  ;;  %s1550_s24 = sadd.s32 4294967294, %s2118_s30   ;;  %s2274_s16 = int_to_ptr.vmem [resolvable:$true] %s319_s16 }
  0x38   : > { %p73_p0 = scmp.ne.s32.totalorder %s2110_s28, %s2106_s27  ;;  %p2767_p4 = scmp.eq.s32.totalorder %s2277_s13, 0 }
  0x39   : > { %p222_p10 = scmp.eq.s32.totalorder %s2277_s13, 1  ;;  %p228_p13 = scmp.eq.s32.totalorder %s1550_s24, 1 }
  0x3a   : > { %p2286_p1 = por %p2767_p4, %p73_p0  ;;  %p1551_p2 = scmp.ge.s32.totalorder %s2118_s30, 1 }
  0x3b   : > { %p2790_p3 = scmp.ne.s32.totalorder %s2114_s29, %s2110_s28  ;;  %p2298_p7 = por %p228_p13, %p73_p0 }
  0x3c   : > { %s2789_s15 = scalar_select %p2286_p1, 1, 0 }
  0x3d   : > { %p2294_p5 = por %p222_p10, %p2790_p3  ;;  %p261_p9 = scmp.lt.s32.totalorder %s2118_s30, 3 }
  0x3e   : > { %s2792_s21 = scalar_select %p2298_p7, 1, 0 }
  0x3f   : > { %s2791_s19 = scalar_select %p2294_p5, 1, 0 }
  0x40   : > { %2793 = sst [smem:[#allocation23_spill]] %s2792_s21  ;;  %p2304_p12 = pnand %p1551_p2, %p261_p9 }
  0x41   : > { %s2123_s18 = smov [#allocation3]   ;;  %s1560_s24 = sshll.u32 %s2217_s14, 3 }
  0x42   : > { %s2794_s17 = scalar_select %p2304_p12, 1, 0 }
  0x43   : > { %s273_s23 = sshll.u32 %s2123_s18, 4  ;;  %s1924_s10 = scalar_lea.hbm %s2237_s25, 256  ;;  %s2308_s23 = int_to_ptr.vmem [resolvable:$true] %s273_s23 }
  0x44   : > { %p1925_p0 = scmp.ne.s32.totalorder %s2237_s25, %s1924_s10  ;;  %s1929_s12 = scalar_lea.hbm %s2787_s2, 512 }
  0x45   : > { %p1930_p2 = scmp.lt.u32.totalorder %s2237_s25, %s2787_s2  ;;  %p1931_p9 = scmp.lt.u32.totalorder %s1929_s12, %s1924_s10 }
  0x46   : > { %p1927_p13 = pnand %p1925_p0, %p2245_p8  ;;  %p1933_p4 = scmp.lt.u32.totalorder %s1924_s10, %s2237_s25 }
  0x47   : > { %p1932_p11 = por %p1931_p9, %p1930_p2 }
  0x48   : > { %p1928_p3 = pneg %p1927_p13 }
  0x49   : > { %p1934_p7 = por %p1933_p4, %p1932_p11 }
  0x4b   : > { %p1935_p5 = pnand %p1934_p7, %p1928_p3 }
  0x4d   : > { %1938 = shalt.err (!%p1935_p5)
}
  0x4e   : > { %s1939_s18 = scalar_lea.vmem %s2274_s16, 256  ;;  %s2124_s1 = smov [#allocation8]  }
  0x4f   : > { %p1940_p0 = scmp.ne.s32.totalorder %s2274_s16, %s1939_s18  ;;  %s1944_s20 = sshll.u32 %s2124_s1, 4  ;;  %s1945_s20 = int_to_ptr.vmem [resolvable:$false] %s1944_s20 }
  0x50   : > { %s1946_s29 = scalar_lea.vmem %s1945_s20, 512  ;;  %p1947_p1 = scmp.lt.s32.totalorder %s2274_s16, %s1945_s20 }
  0x51   : > { %p1942_p13 = pnand %p1940_p0, %p2245_p8  ;;  %p1948_p12 = scmp.lt.s32.totalorder %s1946_s29, %s1939_s18 }
  0x53   : > { %p1943_p10 = pneg %p1942_p13  ;;  %p1949_p2 = por %p1948_p12, %p1947_p1 }
  0x55   : > { %p1950_p9 = pnand %p1949_p2, %p1943_p10 }
  0x57   : > { %1953 = shalt.err (!%p1950_p9)
}
  0x58   : > { %s2795_s9 = smov 4   ;;  %s2796_s12 = smov 64  }
  0x59   : > { %1763 = dma.hbm_to_vmem [thread:$0]  (!%p2228_p6), %s2237_s25, 256, %s2274_s16, %s2239_s26, %s2796_s12, %s2796_s12, %s2795_s9  }
  0x5a   : > { %p2797_p4 = scmp.eq.s32.totalorder %s2277_s13, 0  ;;  %p2798_p5 = scmp.ne.s32.totalorder %s2794_s17, 0 }
  0x5b   : > { %s1561_s18 = sshll.u32 %s2118_s30, 7  ;;  %s339_s2 = scalar_lea.vmem [#allocation9], %s1560_s24 }
  0x5c   : > { %p2799_p7 = pneg %p2798_p5  ;;  %s2351_s29 = scalar_lea.hbm %s2754_s4, %s1561_s18 }
  0x5d   : > { %s346_s21 = sshll.u32 %s339_s2, 4  ;;  %s1954_s16 = scalar_lea.hbm %s2750_s0, 512  ;;  %s2355_s21 = int_to_ptr.vmem [resolvable:$true] %s346_s21 }
  0x5e   : > { %p2343_p11 = pnand %p2799_p7, %p2797_p4  ;;  %p1955_p1 = scmp.ne.s32.totalorder %s2750_s0, %s1954_s16 }
  0x5f   : > { %p1961_p0 = scmp.lt.u32.totalorder %s1954_s16, %s2750_s0 }
  0x60   : > { %p1956_p12 = pneg %p2343_p11 }
  0x62   : > { %p1957_p10 = pnand %p1956_p12, %p1955_p1 }
  0x64   : > { %p1958_p3 = pneg %p1957_p10 }
  0x66   : > { %p1963_p13 = pnand %p1961_p0, %p1958_p3 }
  0x68   : > { %1966 = shalt.err (!%p1963_p13)
}
  0x69   : > { %s1967_s2 = scalar_lea.vmem %s2308_s23, 512  ;;  %p1975_p7 = scmp.lt.s32.totalorder %s2308_s23, %s2308_s23 }
  0x6a   : > { %p1968_p2 = scmp.ne.s32.totalorder %s2308_s23, %s1967_s2  ;;  %p1976_p5 = scmp.lt.s32.totalorder %s1967_s2, %s1967_s2 }
  0x6c   : > { %p1970_p9 = pnand %p1968_p2, %p1956_p12  ;;  %p1977_p6 = por %p1976_p5, %p1975_p7 }
  0x6e   : > { %p1971_p4 = pneg %p1970_p9 }
  0x70   : > { %p1978_p8 = pnand %p1977_p6, %p1971_p4 }
  0x72   : > { %1981 = shalt.err (!%p1978_p8)
}
  0x73   : > { %1756 = dma.hbm_to_vmem [thread:$0]  (!%p2343_p11), %s2750_s0, 512, %s2308_s23, [#allocation4], %s2796_s12, %s2796_s12, %s2795_s9  }
  0x74   : > { %s336_s24 = scalar_lea.sflag [#allocation10], %s2217_s14  ;;  %s1982_s20 = scalar_lea.hbm %s2351_s29, 128 }
  0x75   : > { %p1983_p6 = scmp.ne.s32.totalorder %s2351_s29, %s1982_s20  ;;  %p2801_p8 = scmp.ne.s32.totalorder %s2788_s11, 0 }
  0x76   : > { %s1987_s26 = scalar_lea.hbm %s2754_s4, 256  ;;  %p1988_p12 = scmp.lt.u32.totalorder %s2351_s29, %s2754_s4 }
  0x77   : > { %p1985_p5 = pnand %p1983_p6, %p2801_p8  ;;  %p1989_p10 = scmp.lt.u32.totalorder %s1987_s26, %s1982_s20 }
  0x78   : > { %p1991_p0 = scmp.lt.u32.totalorder %s1982_s20, %s2351_s29 }
  0x79   : > { %p1986_p1 = pneg %p1985_p5  ;;  %p1990_p3 = por %p1989_p10, %p1988_p12 }
  0x7b   : > { %p1992_p13 = por %p1991_p0, %p1990_p3 }
  0x7d   : > { %p1993_p2 = pnand %p1992_p13, %p1986_p1 }
  0x7f   : > { %1996 = shalt.err (!%p1993_p2)
}
  0x80   : > { %s1997_s14 = scalar_lea.vmem %s2355_s21, 128  ;;  %s2125_s23 = smov [#allocation9]  }
  0x81   : > { %p1998_p11 = scmp.ne.s32.totalorder %s2355_s21, %s1997_s14  ;;  %s2002_s9 = sshll.u32 %s2125_s23, 4  ;;  %s2003_s9 = int_to_ptr.vmem [resolvable:$false] %s2002_s9 }
  0x82   : > { %s2004_s12 = scalar_lea.vmem %s2003_s9, 256  ;;  %p2005_p7 = scmp.lt.s32.totalorder %s2355_s21, %s2003_s9 }
  0x83   : > { %p2000_p9 = pnand %p1998_p11, %p2801_p8  ;;  %p2006_p6 = scmp.lt.s32.totalorder %s2004_s12, %s1997_s14 }
  0x85   : > { %p2001_p4 = pneg %p2000_p9  ;;  %p2007_p5 = por %p2006_p6, %p2005_p7 }
  0x87   : > { %p2008_p12 = pnand %p2007_p5, %p2001_p4 }
  0x89   : > { %2011 = shalt.err (!%p2008_p12)
}
  0x8a   : > { %p2802_p1 = scmp.ne.s32.totalorder %s2786_s22, 0  ;;  %p2803_p10 = scmp.ne.s32.totalorder %s2794_s17, 0 }
  0x8b   : > { %p2804_p8 = scmp.eq.s32.totalorder (!%p2803_p10), %s2277_s13, 0 }
  0x8c   : > { %1766 = dma.hbm_to_vmem [thread:$0]  (!%p2802_p1), %s2351_s29, 128, %s2355_s21, %s336_s24  }
  0x8d   : > { %362 = sbr.rel (%p2803_p10) target bundleno = 6180 (0x1824), region = 44 }
  0x94   : > { %2085 = dma.done.wait (%p2804_p8), [#allocation4], 512   ;;  %p2805_p3 = pmov %p2804_p8 }
  0x95   : > { %s368_s11 = sand.u32 1, %s2277_s13   ;;  %s2411_s18 = sand.u32 1, %s2110_s28  }
  0x96   : > { %2087 = vsyncadd (%p2805_p3), [#allocation4], 4294966784  ;;  %s1564_s22 = sshll.u32 %s2411_s18, 4  ;;  %s369_s2 = scalar_lea.sflag [#allocation7], %s368_s11 }
  0x97   : > { %s372_s7 = scalar_lea.vmem [#allocation6], %s1564_s22  ;;  %p2806_p0 = scmp.ne.s32.totalorder %s2789_s15, 0 }
  0x99   : > { %2089 = dma.done.wait (%p2806_p0), %s369_s2, 512  }
  0x9a   : > { %2091 = vsyncadd (%p2806_p0), %s369_s2, 4294966784  ;;  %s2419_s21 = sshll.u32 %s2411_s18, 3  ;;  %s2421_s17 = scalar_lea.vmem [#allocation8], %s1564_s22 }
  0x9b   : > { %s387_s29 = scalar_lea.sflag [#allocation10], %s2411_s18  ;;  %s390_s27 = scalar_lea.vmem [#allocation9], %s2419_s21 }
  0x9c   : > { %2093 = dma.done.wait (%p2806_p0), %s387_s29, 128  }
  0x9d   : > { %2095 = vsyncadd (%p2806_p0), %s387_s29, 4294967168  ;;  %p445_p13 = scmp.lt.s32.totalorder %s2277_s13, 1  ;;  %s437_s15 = scalar_lea.vmem [#allocation11], %s2419_s21 }
  0x9e   : > { %s444_s23 = scalar_lea.vmem [#allocation12], %s2419_s21  ;;  %p2807_p2 = scmp.ne.s32.totalorder %s2277_s13, 0 }
  0x9f   : > { %s2431_s24 = scalar_select %p445_p13, %s2277_s13, 1 }
  0xa0   : > { %456 = sbr.rel (%p2807_p2) target bundleno = 167 (0xa7), region = 64  ;;  %v1818_v0 = vld [vmem:[#allocation3] sm:$0xff] (!%p2807_p2)   ;;  %v1819_v1 = vld [vmem:[#allocation3 + $0x8] sm:$0xff] (!%p2807_p2)   ;;  %v1820_v2 = vld [vmem:[#allocation3 + $0x10] sm:$0xff] (!%p2807_p2)  }
  0xa1   : > { %s447_s25 = scalar_lea.vmem %s2753_s3, %s2431_s24  ;;  %s1569_s26 = sshll.u32 %s2431_s24, 3  ;;  %489 = vst [vmem:[#allocation2] sm:$0xff] (!%p2807_p2), %v1818_v0  ;;  %490 = vst [vmem:[#allocation2 + $0x8] sm:$0xff] (!%p2807_p2), %v1819_v1  ;;  %v1821_v3 = vld [vmem:[#allocation3 + $0x18] sm:$0xff] (!%p2807_p2)  }
  0xa2   : > { %s2441_s14 = scalar_lea.vmem %s2755_s5, %s1569_s26  ;;  %491 = vst [vmem:[#allocation2 + $0x10] sm:$0xff] (!%p2807_p2), %v1820_v2  ;;  %492 = vst [vmem:[#allocation2 + $0x18] sm:$0xff] (!%p2807_p2), %v1821_v3 }
  0xa7 PF: > { %p1575_p11 = scmp.le.s32.totalorder %s2277_s13, 0 }
  0xa8   : > { %v1822_v4 = vld [vmem:[%s372_s7] sm:$0xff] (!%p1575_p11)   ;;  %v1823_v5 = vld [vmem:[%s372_s7 + $0x8] sm:$0xff] (!%p1575_p11)   ;;  %vm548_vm0 = vcmask (!%p1575_p11), 261120  }
  0xa9   : > { %496 = sbr.rel (%p1575_p11) target bundleno = 397 (0x18d), region = 68  ;;  %1659 = vmatprep.subr.bf16.mxu0 (!%p1575_p11), %v1822_v4  ;;  %1735 = vmatprep.subr.bf16.mxu1 (!%p1575_p11), %v1822_v4  ;;  %v1824_v6 = vld [vmem:[%s2756_s6] sm:$0xff] (!%p1575_p11)   ;;  %v1825_v7 = vld [vmem:[%s2756_s6 + $0x10] sm:$0xff] (!%p1575_p11)   ;;  %v1826_v8 = vld [vmem:[%s2756_s6 + $0x8] sm:$0xff] (!%p1575_p11)  }
  0xaa   : > { %1660 = vmatpush3.bf16.msra.mxu0 (!%p1575_p11), %v1822_v4  ;;  %1737 = vmatpush3.bf16.msra.mxu1 (!%p1575_p11), %v1822_v4  ;;  %v1827_v9 = vld [vmem:[%s2756_s6 + $0x18] sm:$0xff] (!%p1575_p11)   ;;  %v1576_v11 = vld [vmem:[%s447_s25] ss:$0 sm:$0xff] (!%p1575_p11) }
  0xab   : > { %1661 = vmatprep.subr.bf16.mxu0 (!%p1575_p11), %v1823_v5  ;;  %1736 = vmatprep.subr.bf16.mxu1 (!%p1575_p11), %v1823_v5 }
  0xac   : > { %1663 = vmatprep.mubr.msk.bf16.mxu0 (!%p1575_p11), %vm548_vm0, %v1824_v6  ;;  %1667 = vmatprep.mubr.msk.bf16.mxu1 (!%p1575_p11), %vm548_vm0, %v1825_v7 }
  0xae   : > { %1662 = vmatpush3.bf16.msra.mxu0 (!%p1575_p11), %v1823_v5  ;;  %1738 = vmatpush3.bf16.msra.mxu1 (!%p1575_p11), %v1823_v5 }
  0xb1   : > { %1664 = vmatmul.mubr.msk.bf16.vlgmr.msra.gmra.mrb[0].mxu0 %vm548_vm0, %v1826_v8  ;;  %1668 = vmatmul.mubr.msk.bf16.vlgmr.msra.gmra.mrb[0].mxu1 %vm548_vm0, %v1827_v9 }
 0x184   : > { %v1665_v10 = vpop.f32.mrb[0].mxu0  ;;  %v1669_v12 = vpop.f32.mrb[0].mxu1 }
 0x185   : > { %v595_v13 = vpop.f32.mrb[1].mxu0  ;;  %v611_v14 = vpop.f32.mrb[1].mxu1  ;;  %v604_v17 = vadd.f32 %v1665_v10, %v1576_v11  ;;  %v620_v18 = vadd.f32 %v1669_v12, %v1576_v11 }
 0x186   : > { %v1666_v15 = vpop.f32.mrb[2].mxu0  ;;  %v1670_v16 = vpop.f32.mrb[2].mxu1  ;;  %v596_v23 = vadd.f32 %v1576_v11, %v595_v13  ;;  %v612_v24 = vadd.f32 %v1576_v11, %v611_v14 }
 0x187   : > { %v607_v19 = vadd.f32 %v1666_v15, %v1576_v11  ;;  %v623_v20 = vadd.f32 %v1670_v16, %v1576_v11  ;;  %v598_v21 = vpop.f32.mrb[3].mxu0  ;;  %v614_v22 = vpop.f32.mrb[3].mxu1 }
 0x188   : > { %v599_v25 = vadd.f32 %v1576_v11, %v598_v21  ;;  %v615_v26 = vadd.f32 %v1576_v11, %v614_v22 }
 0x189   : > { %v627_v27 = vpack.c.bf16 %v607_v19, %v604_v17  ;;  %v629_v28 = vpack.c.bf16 %v623_v20, %v620_v18 }
 0x18a   : > { %v626_v29 = vpack.c.bf16 %v599_v25, %v596_v23  ;;  %v628_v30 = vpack.c.bf16 %v615_v26, %v612_v24 }
 0x18b   : > { %631 = vst [vmem:[#allocation2 + $0x8] sm:$0xff] %v627_v27  ;;  %633 = vst [vmem:[#allocation2 + $0x18] sm:$0xff] %v629_v28 }
 0x18c   : > { %630 = vst [vmem:[#allocation2] sm:$0xff] %v626_v29  ;;  %632 = vst [vmem:[#allocation2 + $0x10] sm:$0xff] %v628_v30 }
 0x18d PF: > { %v2466_v31 = vld [vmem:[%s2421_s17] sm:$0xff]   ;;  %v2126_v32 = vmov 0.0   ;;  %v2472_v33 = vld [vmem:[%s2421_s17 + $0x8] sm:$0xff]   ;;  %vm2127_vm1 = vmmov 0   ;;  %vm660_vm2 = vcmask 261120   ;;  %v638_v45 = vlaneseq  ;;  %s2128_s17 = smov 64  }
 0x18e   : > { %1671 = vmatprep.subr.bf16.mxu0 %v2126_v32  ;;  %1679 = vmatprep.subr.bf16.mxu1 %v2126_v32  ;;  %v643_v34 = vld [vmem:[%s390_s27] sm:$0xff]  ;;  %s2129_s27 = smov 32   ;;  %vm743_vm6 = vcmask 257024   ;;  %s2130_s12 = smov 96  }
 0x18f   : > { %1672 = vmatpush3.bf16.msra.mxu0 %v2466_v31  ;;  %1675 = vmatprep.mubr.msk.bf16.mxu0 %vm2127_vm1, %v2126_v32  ;;  %v647_v35 = vpack.c.bf16 %v643_v34, %v643_v34  ;;  %v639_v47 = vand.u32 127, %v638_v45  ;;  %v644_v52 = vld [vmem:[%s2441_s14] sm:$0xff]  ;;  %s1615_s11 = sshll.u32 %s2277_s13, 7  ;;  %s1369_s22 = sshll.u32 %s444_s23, 4  ;;  %s2646_s22 = int_to_ptr.vmem [resolvable:$true] %s1369_s22 }
 0x190   : > { %1673 = vmatprep.subr.bf16.mxu0 %v2126_v32  ;;  %1680 = vmatpush3.bf16.msra.mxu1 %v2466_v31  ;;  %s2644_s29 = scalar_lea.hbm %s2758_s8, %s1615_s11  ;;  %s1340_s20 = scalar_lea.sflag [#allocation13], %s2411_s18 }
 0x191   : > { %1681 = vmatprep.subr.bf16.mxu1 %v2126_v32  ;;  %1683 = vmatprep.mubr.msk.bf16.mxu1 %vm2127_vm1, %v2126_v32  ;;  %vm640_vm3 = vcmp.ge.s32.totalorder %v639_v47, 64  ;;  %vm641_vm4 = vcmp.lt.s32.totalorder %v639_v47, 96  ;;  %s2012_s10 = scalar_lea.vmem %s2646_s22, 128  ;;  %p2810_p4 = scmp.ne.s32.totalorder %s2791_s19, 0 }
 0x192   : > { %vm2497_vm5 = vmand %vm640_vm3, %vm641_vm4  ;;  %p2013_p9 = scmp.ne.s32.totalorder %s2646_s22, %s2012_s10  ;;  %s2131_s26 = smov [#allocation12]  }
 0x193   : > { %1674 = vmatpush3.bf16.msra.mxu0 %v2472_v33  ;;  %v2494_v36 = vld [vmem:[#allocation2] ss:$8 sps:$4 sm:$0xff]   ;;  %v745_v0 = vld [vmem:[#allocation2] sm:$0xf0] }
 0x194   : > { %1682 = vmatpush3.bf16.msra.mxu1 %v2472_v33  ;;  %1687 = vmatprep.subr.bf16.mxu0 %v2126_v32  ;;  %v646_v37 = vunpack.c.l.bf16 %v2494_v36  ;;  %v747_v1 = vrot.slane %v745_v0, 4  ;;  %v830_v24 = vunpack.c.h.bf16 %v2494_v36  ;;  %p2014_p7 = pnand %p2013_p9, %p2810_p4 }
 0x195   : > { %1695 = vmatprep.subr.bf16.mxu1 %v2126_v32 }
 0x196   : > { %1676 = vmatmul.mubr.msk.bf16.vlgmr.msra.gmra.mrb[0].mxu0 %vm660_vm2, %v647_v35  ;;  %v749_v2 = vunpack.c.l.bf16 %v747_v1  ;;  %p2015_p6 = pneg %p2014_p7 }
 0x197   : > { %1688 = vmatpush3.bf16.msra.mxu0 %v2466_v31  ;;  %1691 = vmatprep.mubr.msk.bf16.mxu0 %vm2127_vm1, %v2126_v32 }
 0x198   : > { %1689 = vmatprep.subr.bf16.mxu0 %v2126_v32 }
 0x19b   : > { %1690 = vmatpush3.bf16.msra.mxu0 %v2472_v33 }
 0x19c   : > { %1703 = vmatprep.subr.bf16.mxu0 %v2126_v32 }
 0x269   : > { %v698_v38 = vpop.f32.mrb[0].mxu0 }
 0x26a   : > { %v704_v39 = vadd.f32 %v698_v38, %v646_v37  ;;  %v1677_v40 = vpop.f32.mrb[1].mxu0 }
 0x26b   : > { %v701_v41 = vpop.f32.mrb[2].mxu0 }
 0x26c   : > { %v1590_v42 = vmul.f32 -1.442695, %v704_v39  ;;  %v1678_v43 = vpop.f32.mrb[3].mxu0 }
 0x26e   : > { %1830 = vpow2.f32 %v1590_v42 }
 0x26f   : > { %1832 = vtanh.f32 %v704_v39 }
 0x278   : > { %v1831_v44 = vpop.eup %1830 }
 0x279   : > { %v709_v46 = vadd.f32 1.0, %v1831_v44  ;;  %v1833_v49 = vpop.eup %1832 }
 0x27b   : > { %1834 = vrcp.f32 %v709_v46 }
 0x285   : > { %v1835_v50 = vpop.eup %1834 }
 0x286   : > { %v714_v51 = vsel %vm2497_vm5, %v1833_v49, %v1835_v50  ;;  %v910_v50 = vld [vmem:[#allocation2 + $0x8] sm:$0xf0] }
 0x287   : > { %721 = vrot.lane.b32.xlu0 %v714_v51, %s2128_s17 }
 0x28b   : > { %716 = vrot.lane.b32.xlu0 %v644_v52, %s2129_s27 }
 0x2f9   : > { %v722_v53 = vpop.permute.xlu0 %721 }
 0x2fa   : > { %v724_v54 = vmul.f32 %v722_v53, %v714_v51 }
 0x2fc   : > { %726 = vrot.lane.b32.xlu1 %v724_v54, %s2129_s27 }
 0x2fd   : > { %v717_v55 = vpop.permute.xlu0 %716 }
 0x2fe   : > { %v719_v56 = vmul.f32 %v717_v55, %v714_v51 }
 0x36e   : > { %v727_v57 = vpop.permute.xlu1 %726 }
 0x36f   : > { %v729_v58 = vadd.f32 %v727_v57, %v719_v56 }
 0x371   : > { %1836 = vtanh.f32 %v729_v58 }
 0x37b   : > { %v1837_v59 = vpop.eup %1836 }
 0x37c   : > { %732 = vrot.lane.b32.xlu1 %v1837_v59, %s2128_s17 }
 0x3ee   : > { %v733_v60 = vpop.permute.xlu1 %732 }
 0x3ef   : > { %v735_v61 = vmul.f32 %v733_v60, %v714_v51  ;;  %v912_v51 = vrot.slane %v910_v50, 4 }
 0x3f1   : > { %v2508_v62 = vpack.c.bf16 %v735_v61, %v735_v61  ;;  %v914_v52 = vunpack.c.l.bf16 %v912_v51 }
 0x3f3   : > { %750 = vrot.lane.b32.xlu0 %v2508_v62, %s2129_s27 }
 0x465   : > { %v751_v63 = vpop.permute.xlu0 %750 }
 0x466   : > { %1684 = vmatmul.mubr.msk.bf16.vlgmr.msra.gmra.mrb[0].mxu1 %vm660_vm2, %v751_v63 }
 0x467   : > { %1696 = vmatpush3.bf16.msra.mxu1 %v2466_v31  ;;  %1699 = vmatprep.mubr.msk.bf16.mxu1 %vm2127_vm1, %v2126_v32 }
 0x468   : > { %1697 = vmatprep.subr.bf16.mxu1 %v2126_v32 }
 0x46b   : > { %1698 = vmatpush3.bf16.msra.mxu1 %v2472_v33 }
 0x46c   : > { %1711 = vmatprep.subr.bf16.mxu1 %v2126_v32 }
 0x539   : > { %v789_v3 = vpop.f32.mrb[0].mxu1 }
 0x53a   : > { %v795_v4 = vadd.f32 %v789_v3, %v749_v2  ;;  %v1685_v5 = vpop.f32.mrb[1].mxu1 }
 0x53b   : > { %v792_v6 = vpop.f32.mrb[2].mxu1 }
 0x53c   : > { %v1593_v7 = vmul.f32 -1.442695, %v795_v4  ;;  %v1686_v8 = vpop.f32.mrb[3].mxu1 }
 0x53e   : > { %1838 = vpow2.f32 %v1593_v7 }
 0x53f   : > { %1840 = vtanh.f32 %v795_v4 }
 0x548   : > { %v1839_v9 = vpop.eup %1838 }
 0x549   : > { %v800_v10 = vadd.f32 1.0, %v1839_v9  ;;  %v1841_v11 = vpop.eup %1840 }
 0x54b   : > { %1842 = vrcp.f32 %v800_v10 }
 0x555   : > { %v1843_v12 = vpop.eup %1842 }
 0x556   : > { %v803_v13 = vsel %vm2497_vm5, %v1841_v11, %v1843_v12  ;;  %v2567_v11 = vld [vmem:[#allocation2 + $0x10] ss:$8 sps:$4 sm:$0xff]  }
 0x557   : > { %806 = vrot.lane.b32.xlu1 %v803_v13, %s2128_s17  ;;  %v804_v16 = vmul.f32 %v803_v13, %v729_v58  ;;  %v995_v12 = vunpack.c.l.bf16 %v2567_v11 }
 0x5c9   : > { %v807_v14 = vpop.permute.xlu1 %806 }
 0x5ca   : > { %v809_v15 = vmul.f32 %v807_v14, %v803_v13 }
 0x5cc   : > { %811 = vrot.lane.b32.xlu0 %v809_v15, %s2129_s27 }
 0x63e   : > { %v812_v17 = vpop.permute.xlu0 %811 }
 0x63f   : > { %v814_v18 = vadd.f32 %v812_v17, %v804_v16 }
 0x641   : > { %1844 = vtanh.f32 %v814_v18 }
 0x64b   : > { %v1845_v19 = vpop.eup %1844 }
 0x64c   : > { %817 = vrot.lane.b32.xlu1 %v1845_v19, %s2128_s17 }
 0x6be   : > { %v818_v20 = vpop.permute.xlu1 %817 }
 0x6bf   : > { %v820_v21 = vmul.f32 %v818_v20, %v803_v13 }
 0x6c1   : > { %v2524_v22 = vpack.c.bf16 %v820_v21, %v820_v21 }
 0x6c3   : > { %831 = vrot.lane.b32.xlu0 %v2524_v22, %s2129_s27 }
 0x735   : > { %v832_v23 = vpop.permute.xlu0 %831 }
 0x736   : > { %1692 = vmatmul.mubr.msk.bf16.vlgmr.msra.gmra.mrb[4].mxu0 %vm660_vm2, %v832_v23 }
 0x737   : > { %1704 = vmatpush3.bf16.msra.mxu0 %v2466_v31  ;;  %1707 = vmatprep.mubr.msk.bf16.mxu0 %vm2127_vm1, %v2126_v32 }
 0x738   : > { %1705 = vmatprep.subr.bf16.mxu0 %v2126_v32 }
 0x73b   : > { %1706 = vmatpush3.bf16.msra.mxu0 %v2472_v33 }
 0x73c   : > { %1719 = vmatprep.subr.bf16.mxu0 %v2126_v32 }
 0x809   : > { %v870_v25 = vpop.f32.mrb[4].mxu0 }
 0x80a   : > { %v876_v26 = vadd.f32 %v870_v25, %v830_v24  ;;  %v1693_v27 = vpop.f32.mrb[5].mxu0 }
 0x80b   : > { %v873_v28 = vpop.f32.mrb[6].mxu0 }
 0x80c   : > { %v1596_v29 = vmul.f32 -1.442695, %v876_v26  ;;  %v1694_v30 = vpop.f32.mrb[7].mxu0 }
 0x80e   : > { %1846 = vpow2.f32 %v1596_v29 }
 0x80f   : > { %1848 = vtanh.f32 %v876_v26 }
 0x818   : > { %v1847_v34 = vpop.eup %1846 }
 0x819   : > { %v881_v35 = vadd.f32 1.0, %v1847_v34  ;;  %v1849_v37 = vpop.eup %1848 }
 0x81b   : > { %1850 = vrcp.f32 %v881_v35 }
 0x825   : > { %v1851_v38 = vpop.eup %1850 }
 0x826   : > { %v884_v39 = vsel %vm2497_vm5, %v1849_v37, %v1851_v38 }
 0x827   : > { %887 = vrot.lane.b32.xlu1 %v884_v39, %s2128_s17  ;;  %v885_v41 = vmul.f32 %v884_v39, %v814_v18 }
 0x899   : > { %v888_v40 = vpop.permute.xlu1 %887 }
 0x89a   : > { %v890_v36 = vmul.f32 %v888_v40, %v884_v39 }
 0x89c   : > { %892 = vrot.lane.b32.xlu0 %v890_v36, %s2129_s27 }
 0x90e   : > { %v893_v42 = vpop.permute.xlu0 %892 }
 0x90f   : > { %v895_v43 = vadd.f32 %v893_v42, %v885_v41 }
 0x911   : > { %1852 = vtanh.f32 %v895_v43 }
 0x91b   : > { %v1853_v44 = vpop.eup %1852 }
 0x91c   : > { %898 = vrot.lane.b32.xlu1 %v1853_v44, %s2128_s17 }
 0x98e   : > { %v899_v45 = vpop.permute.xlu1 %898 }
 0x98f   : > { %v901_v46 = vmul.f32 %v899_v45, %v884_v39  ;;  %v1075_v39 = vld [vmem:[#allocation2 + $0x10] sm:$0xf0] }
 0x990   : > { %v1077_v40 = vrot.slane %v1075_v39, 4 }
 0x991   : > { %v2541_v47 = vpack.c.bf16 %v901_v46, %v901_v46 }
 0x992   : > { %v1079_v36 = vunpack.c.l.bf16 %v1077_v40 }
 0x993   : > { %915 = vrot.lane.b32.xlu0 %v2541_v47, %s2129_s27 }
 0xa05   : > { %v916_v49 = vpop.permute.xlu0 %915 }
 0xa06   : > { %1700 = vmatmul.mubr.msk.bf16.vlgmr.msra.gmra.mrb[4].mxu1 %vm660_vm2, %v916_v49 }
 0xa07   : > { %1712 = vmatpush3.bf16.msra.mxu1 %v2466_v31  ;;  %1715 = vmatprep.mubr.msk.bf16.mxu1 %vm2127_vm1, %v2126_v32 }
 0xa08   : > { %1713 = vmatprep.subr.bf16.mxu1 %v2126_v32 }
 0xa0b   : > { %1714 = vmatpush3.bf16.msra.mxu1 %v2472_v33 }
 0xa0c   : > { %1727 = vmatprep.subr.bf16.mxu1 %v2126_v32 }
 0xad9   : > { %v954_v53 = vpop.f32.mrb[4].mxu1 }
 0xada   : > { %v960_v54 = vadd.f32 %v954_v53, %v914_v52  ;;  %v1701_v55 = vpop.f32.mrb[5].mxu1 }
 0xadb   : > { %v957_v56 = vpop.f32.mrb[6].mxu1 }
 0xadc   : > { %v1599_v57 = vmul.f32 -1.442695, %v960_v54  ;;  %v1702_v58 = vpop.f32.mrb[7].mxu1 }
 0xade   : > { %1854 = vpow2.f32 %v1599_v57 }
 0xadf   : > { %1856 = vtanh.f32 %v960_v54 }
 0xae8   : > { %v1855_v59 = vpop.eup %1854 }
 0xae9   : > { %v965_v60 = vadd.f32 1.0, %v1855_v59  ;;  %v1857_v61 = vpop.eup %1856 }
 0xaeb   : > { %1858 = vrcp.f32 %v965_v60 }
 0xaf5   : > { %v1859_v63 = vpop.eup %1858 }
 0xaf6   : > { %v968_v0 = vsel %vm2497_vm5, %v1857_v61, %v1859_v63  ;;  %v1160_v61 = vunpack.c.h.bf16 %v2567_v11 }
 0xaf7   : > { %971 = vrot.lane.b32.xlu1 %v968_v0, %s2128_s17  ;;  %v969_v3 = vmul.f32 %v968_v0, %v895_v43 }
 0xb69   : > { %v972_v1 = vpop.permute.xlu1 %971 }
 0xb6a   : > { %v974_v2 = vmul.f32 %v972_v1, %v968_v0 }
 0xb6c   : > { %976 = vrot.lane.b32.xlu0 %v974_v2, %s2129_s27 }
 0xbde   : > { %v977_v4 = vpop.permute.xlu0 %976 }
 0xbdf   : > { %v979_v5 = vadd.f32 %v977_v4, %v969_v3 }
 0xbe1   : > { %1860 = vtanh.f32 %v979_v5 }
 0xbeb   : > { %v1861_v6 = vpop.eup %1860 }
 0xbec   : > { %982 = vrot.lane.b32.xlu1 %v1861_v6, %s2128_s17 }
 0xc5e   : > { %v983_v7 = vpop.permute.xlu1 %982 }
 0xc5f   : > { %v985_v8 = vmul.f32 %v983_v7, %v968_v0 }
 0xc61   : > { %v2557_v9 = vpack.c.bf16 %v985_v8, %v985_v8 }
 0xc63   : > { %996 = vrot.lane.b32.xlu0 %v2557_v9, %s2129_s27 }
 0xcd5   : > { %v997_v10 = vpop.permute.xlu0 %996 }
 0xcd6   : > { %1708 = vmatmul.mubr.msk.bf16.vlgmr.msra.gmra.mrb[8].mxu0 %vm660_vm2, %v997_v10 }
 0xcd7   : > { %1720 = vmatpush3.bf16.msra.mxu0 %v2466_v31  ;;  %1723 = vmatprep.mubr.msk.bf16.mxu0 %vm2127_vm1, %v2126_v32 }
 0xcd8   : > { %1721 = vmatprep.subr.bf16.mxu0 %v2126_v32 }
 0xcdb   : > { %1722 = vmatpush3.bf16.msra.mxu0 %v2472_v33 }
 0xda9   : > { %v1035_v13 = vpop.f32.mrb[8].mxu0 }
 0xdaa   : > { %v1041_v14 = vadd.f32 %v1035_v13, %v995_v12  ;;  %v1709_v15 = vpop.f32.mrb[9].mxu0 }
 0xdab   : > { %v1038_v16 = vpop.f32.mrb[10].mxu0 }
 0xdac   : > { %v1602_v17 = vmul.f32 -1.442695, %v1041_v14  ;;  %v1710_v18 = vpop.f32.mrb[11].mxu0 }
 0xdae   : > { %1862 = vpow2.f32 %v1602_v17 }
 0xdaf   : > { %1864 = vtanh.f32 %v1041_v14 }
 0xdb8   : > { %v1863_v19 = vpop.eup %1862 }
 0xdb9   : > { %v1046_v20 = vadd.f32 1.0, %v1863_v19  ;;  %v1865_v21 = vpop.eup %1864 }
 0xdbb   : > { %1866 = vrcp.f32 %v1046_v20 }
 0xdc5   : > { %v1867_v23 = vpop.eup %1866 }
 0xdc6   : > { %v1049_v24 = vsel %vm2497_vm5, %v1865_v21, %v1867_v23  ;;  %v1240_v21 = vld [vmem:[#allocation2 + $0x18] sm:$0xf0] }
 0xdc7   : > { %1052 = vrot.lane.b32.xlu1 %v1049_v24, %s2128_s17  ;;  %v1050_v27 = vmul.f32 %v1049_v24, %v979_v5  ;;  %v1242_v23 = vrot.slane %v1240_v21, 4 }
 0xe39   : > { %v1053_v25 = vpop.permute.xlu1 %1052 }
 0xe3a   : > { %v1055_v26 = vmul.f32 %v1053_v25, %v1049_v24 }
 0xe3c   : > { %1057 = vrot.lane.b32.xlu0 %v1055_v26, %s2129_s27 }
 0xeae   : > { %v1058_v28 = vpop.permute.xlu0 %1057 }
 0xeaf   : > { %v1060_v29 = vadd.f32 %v1058_v28, %v1050_v27 }
 0xeb1   : > { %1868 = vtanh.f32 %v1060_v29 }
 0xebb   : > { %v1869_v30 = vpop.eup %1868 }
 0xebc   : > { %1063 = vrot.lane.b32.xlu1 %v1869_v30, %s2128_s17 }
 0xf2e   : > { %v1064_v34 = vpop.permute.xlu1 %1063 }
 0xf2f   : > { %v1066_v35 = vmul.f32 %v1064_v34, %v1049_v24  ;;  %v1244_v24 = vunpack.c.l.bf16 %v1242_v23 }
 0xf31   : > { %v2575_v37 = vpack.c.bf16 %v1066_v35, %v1066_v35 }
 0xf33   : > { %1080 = vrot.lane.b32.xlu0 %v2575_v37, %s2129_s27 }
 0xfa5   : > { %v1081_v38 = vpop.permute.xlu0 %1080 }
 0xfa6   : > { %1716 = vmatmul.mubr.msk.bf16.vlgmr.msra.gmra.mrb[8].mxu1 %vm660_vm2, %v1081_v38 }
 0xfa7   : > { %1728 = vmatpush3.bf16.msra.mxu1 %v2466_v31  ;;  %1731 = vmatprep.mubr.msk.bf16.mxu1 %vm2127_vm1, %v2126_v32 }
 0xfa8   : > { %1729 = vmatprep.subr.bf16.mxu1 %v2126_v32 }
 0xfab   : > { %1730 = vmatpush3.bf16.msra.mxu1 %v2472_v33 }
0x1079   : > { %v1119_v41 = vpop.f32.mrb[8].mxu1 }
0x107a   : > { %v1125_v42 = vadd.f32 %v1119_v41, %v1079_v36  ;;  %v1717_v43 = vpop.f32.mrb[9].mxu1 }
0x107b   : > { %v1122_v44 = vpop.f32.mrb[10].mxu1 }
0x107c   : > { %v1605_v45 = vmul.f32 -1.442695, %v1125_v42  ;;  %v1718_v46 = vpop.f32.mrb[11].mxu1 }
0x107e   : > { %1870 = vpow2.f32 %v1605_v45 }
0x107f   : > { %1872 = vtanh.f32 %v1125_v42 }
0x1088   : > { %v1871_v49 = vpop.eup %1870 }
0x1089   : > { %v1130_v50 = vadd.f32 1.0, %v1871_v49  ;;  %v1873_v31 = vpop.eup %1872 }
0x108b   : > { %1874 = vrcp.f32 %v1130_v50 }
0x1095   : > { %v1875_v51 = vpop.eup %1874 }
0x1096   : > { %v1133_v32 = vsel %vm2497_vm5, %v1873_v31, %v1875_v51 }
0x1097   : > { %1136 = vrot.lane.b32.xlu1 %v1133_v32, %s2128_s17  ;;  %v1134_v53 = vmul.f32 %v1133_v32, %v1060_v29 }
0x1109   : > { %v1137_v33 = vpop.permute.xlu1 %1136 }
0x110a   : > { %v1139_v52 = vmul.f32 %v1137_v33, %v1133_v32 }
0x110c   : > { %1141 = vrot.lane.b32.xlu0 %v1139_v52, %s2129_s27 }
0x117e   : > { %v1142_v54 = vpop.permute.xlu0 %1141 }
0x117f   : > { %v1144_v55 = vadd.f32 %v1142_v54, %v1134_v53 }
0x1181   : > { %1876 = vtanh.f32 %v1144_v55 }
0x118b   : > { %v1877_v56 = vpop.eup %1876 }
0x118c   : > { %1147 = vrot.lane.b32.xlu1 %v1877_v56, %s2128_s17 }
0x11fe   : > { %v1148_v57 = vpop.permute.xlu1 %1147 }
0x11ff   : > { %v1150_v58 = vmul.f32 %v1148_v57, %v1133_v32 }
0x1201   : > { %v2590_v59 = vpack.c.bf16 %v1150_v58, %v1150_v58 }
0x1203   : > { %1161 = vrot.lane.b32.xlu0 %v2590_v59, %s2129_s27 }
0x1275   : > { %v1162_v60 = vpop.permute.xlu0 %1161 }
0x1276   : > { %1724 = vmatmul.mubr.msk.bf16.vlgmr.msra.gmra.mrb[12].mxu0 %vm660_vm2, %v1162_v60 }
0x1349   : > { %v1200_v63 = vpop.f32.mrb[12].mxu0 }
0x134a   : > { %v1206_v0 = vadd.f32 %v1200_v63, %v1160_v61  ;;  %v1725_v1 = vpop.f32.mrb[13].mxu0 }
0x134b   : > { %v1203_v2 = vpop.f32.mrb[14].mxu0 }
0x134c   : > { %v1608_v3 = vmul.f32 -1.442695, %v1206_v0  ;;  %v1726_v4 = vpop.f32.mrb[15].mxu0 }
0x134e   : > { %1878 = vpow2.f32 %v1608_v3 }
0x134f   : > { %1880 = vtanh.f32 %v1206_v0 }
0x1358   : > { %v1879_v5 = vpop.eup %1878 }
0x1359   : > { %v1211_v6 = vadd.f32 1.0, %v1879_v5  ;;  %v1881_v7 = vpop.eup %1880 }
0x135b   : > { %1882 = vrcp.f32 %v1211_v6 }
0x1365   : > { %v1883_v8 = vpop.eup %1882 }
0x1366   : > { %v1214_v10 = vsel %vm2497_vm5, %v1881_v7, %v1883_v8 }
0x1367   : > { %1217 = vrot.lane.b32.xlu1 %v1214_v10, %s2128_s17  ;;  %v1215_v13 = vmul.f32 %v1214_v10, %v1144_v55 }
0x13d9   : > { %v1218_v12 = vpop.permute.xlu1 %1217 }
0x13da   : > { %v1220_v11 = vmul.f32 %v1218_v12, %v1214_v10 }
0x13dc   : > { %1222 = vrot.lane.b32.xlu0 %v1220_v11, %s2129_s27 }
0x144e   : > { %v1223_v14 = vpop.permute.xlu0 %1222 }
0x144f   : > { %v1225_v15 = vadd.f32 %v1223_v14, %v1215_v13 }
0x1451   : > { %1884 = vtanh.f32 %v1225_v15 }
0x145b   : > { %v1885_v16 = vpop.eup %1884 }
0x145c   : > { %1228 = vrot.lane.b32.xlu1 %v1885_v16, %s2128_s17 }
0x14ce   : > { %v1229_v17 = vpop.permute.xlu1 %1228 }
0x14cf   : > { %v1231_v18 = vmul.f32 %v1229_v17, %v1214_v10 }
0x14d1   : > { %v2601_v19 = vpack.c.bf16 %v1231_v18, %v1231_v18 }
0x14d3   : > { %1245 = vrot.lane.b32.xlu0 %v2601_v19, %s2129_s27 }
0x1545   : > { %v1246_v20 = vpop.permute.xlu0 %1245 }
0x1546   : > { %1732 = vmatmul.mubr.msk.bf16.vlgmr.msra.gmra.mrb[12].mxu1 %vm660_vm2, %v1246_v20 }
0x1619   : > { %v1284_v25 = vpop.f32.mrb[12].mxu1 }
0x161a   : > { %v1290_v26 = vadd.f32 %v1284_v25, %v1244_v24  ;;  %v1733_v27 = vpop.f32.mrb[13].mxu1 }
0x161b   : > { %v1287_v28 = vpop.f32.mrb[14].mxu1 }
0x161c   : > { %v1611_v29 = vmul.f32 -1.442695, %v1290_v26  ;;  %v1734_v30 = vpop.f32.mrb[15].mxu1 }
0x161e   : > { %1886 = vpow2.f32 %v1611_v29 }
0x161f   : > { %1888 = vtanh.f32 %v1290_v26 }
0x1628   : > { %v1887_v34 = vpop.eup %1886 }
0x1629   : > { %v1295_v35 = vadd.f32 1.0, %v1887_v34  ;;  %v1889_v38 = vpop.eup %1888 }
0x162b   : > { %1890 = vrcp.f32 %v1295_v35 }
0x1635   : > { %v1891_v39 = vpop.eup %1890 }
0x1636   : > { %v1298_v40 = vsel %vm2497_vm5, %v1889_v38, %v1891_v39 }
0x1637   : > { %1301 = vrot.lane.b32.xlu1 %v1298_v40, %s2128_s17  ;;  %v1299_v42 = vmul.f32 %v1298_v40, %v1225_v15 }
0x16a9   : > { %v1302_v36 = vpop.permute.xlu1 %1301 }
0x16aa   : > { %v1304_v41 = vmul.f32 %v1302_v36, %v1298_v40 }
0x16ac   : > { %1306 = vrot.lane.b32.xlu0 %v1304_v41, %s2129_s27 }
0x16b0   : > { %740 = vrot.lane.b32.xlu0 %v2508_v62, %s2129_s27 }
0x16b4   : > { %906 = vrot.lane.b32.xlu0 %v2541_v47, %s2129_s27 }
0x16b8   : > { %1071 = vrot.lane.b32.xlu0 %v2575_v37, %s2129_s27 }
0x171e   : > { %v1307_v43 = vpop.permute.xlu0 %1306 }
0x171f   : > { %v1309_v44 = vadd.f32 %v1307_v43, %v1299_v42 }
0x1721   : > { %1892 = vtanh.f32 %v1309_v44 }
0x1722   : > { %v741_v48 = vpop.permute.xlu0 %740 }
0x1723   : > { %744 = vst.msk [vmem:[%s2756_s6] sm:$0xf] %vm743_vm6, %v741_v48 }
0x1726   : > { %v907_v62 = vpop.permute.xlu0 %906 }
0x1727   : > { %909 = vst.msk [vmem:[%s2756_s6 + $0x8] sm:$0xf] %vm743_vm6, %v907_v62 }
0x172a   : > { %v1072_v47 = vpop.permute.xlu0 %1071 }
0x172b   : > { %v1893_v37 = vpop.eup %1892  ;;  %1074 = vst.msk [vmem:[%s2756_s6 + $0x10] sm:$0xf] %vm743_vm6, %v1072_v47 }
0x172c   : > { %1312 = vrot.lane.b32.xlu1 %v1893_v37, %s2128_s17  ;;  %s2016_s17 = sshll.u32 %s2131_s26, 4  ;;  %s2017_s17 = int_to_ptr.vmem [resolvable:$false] %s2016_s17 }
0x172d   : > { %s2018_s24 = scalar_lea.vmem %s2017_s17, 256  ;;  %p2019_p5 = scmp.lt.s32.totalorder %s2646_s22, %s2017_s17 }
0x172e   : > { %p2020_p12 = scmp.lt.s32.totalorder %s2018_s24, %s2012_s10 }
0x1730   : > { %1330 = vrot.lane.b32.xlu1 %v1309_v44, %s2130_s12  ;;  %p2021_p1 = por %p2020_p12, %p2019_p5 }
0x1732   : > { %p2022_p10 = pnand %p2021_p1, %p2015_p6 }
0x1734   : > { %825 = vrot.lane.b32.xlu1 %v2524_v22, %s2129_s27 }
0x1738   : > { %990 = vrot.lane.b32.xlu1 %v2557_v9, %s2129_s27 }
0x173c   : > { %1155 = vrot.lane.b32.xlu1 %v2590_v59, %s2129_s27 }
0x179e   : > { %v1313_v45 = vpop.permute.xlu1 %1312 }
0x179f   : > { %v1315_v46 = vmul.f32 %v1313_v45, %v1298_v40 }
0x17a1   : > { %v1628_v49 = vpack.c.bf16 %v1315_v46, %v1315_v46  ;;  %1325 = vrot.lane.b32.xlu0 %v1315_v46, %s2129_s27 }
0x17a2   : > { %v1331_v22 = vpop.permute.xlu1 %1330 }
0x17a3   : > { %1333 = vst.msk [vmem:[%s444_s23] sm:$0xff] %vm660_vm2, %v1331_v22  ;;  %1320 = vrot.lane.b32.xlu1 %v1628_v49, %s2129_s27 }
0x17a4   : > { %2025 = shalt.err (!%p2022_p10)
}
0x17a5   : > { %s2026_s23 = scalar_lea.hbm %s2644_s29, 128  ;;  %s2030_s1 = scalar_lea.hbm %s2758_s8, 256 }
0x17a6   : > { %p2027_p8 = scmp.ne.s32.totalorder %s2644_s29, %s2026_s23  ;;  %p2031_p13 = scmp.lt.u32.totalorder %s2644_s29, %s2758_s8 }
0x17a7   : > { %p2032_p2 = scmp.lt.u32.totalorder %s2030_s1, %s2026_s23  ;;  %p2034_p9 = scmp.lt.u32.totalorder %s2026_s23, %s2644_s29 }
0x17a8   : > { %p2028_p3 = pnand %p2027_p8, %p2810_p4 }
0x17a9   : > { %p2033_p11 = por %p2032_p2, %p2031_p13 }
0x17aa   : > { %p2029_p0 = pneg %p2028_p3 }
0x17ab   : > { %p2035_p7 = por %p2034_p9, %p2033_p11 }
0x17ad   : > { %p2036_p6 = pnand %p2035_p7, %p2029_p0 }
0x17af   : > { %2039 = shalt.err (!%p2036_p6)
}
0x17b0   : > { %1750 = dma.vmem_to_hbm [thread:$0]  (%p2810_p4), %s2646_s22, 128, %s2644_s29, %s1340_s20   ;;  %1236 = vrot.lane.b32.xlu0 %v2601_v19, %s2129_s27  ;;  %v826_v9 = vpop.permute.xlu1 %825 }
0x17b1   : > { %828 = vst.msk [vmem:[%s2756_s6 + $0x4] sm:$0xf] %vm743_vm6, %v826_v9  ;;  %s1356_s27 = sshll.u32 %s437_s15, 4  ;;  %s2811_s17 = sld [smem:[#allocation26_spill]]  ;;  %s2697_s27 = int_to_ptr.vmem [resolvable:$true] %s1356_s27 }
0x17b2   : > { %s1335_s23 = scalar_lea.sflag [#allocation5], %s2411_s18  ;;  %s2040_s25 = scalar_lea.vmem %s2697_s27, 128 }
0x17b3   : > { %p2041_p5 = scmp.ne.s32.totalorder %s2697_s27, %s2040_s25  ;;  %s2132_s13 = smov [#allocation11]  }
0x17b4   : > { %v991_v50 = vpop.permute.xlu1 %990  ;;  %s2044_s16 = sshll.u32 %s2132_s13, 4  ;;  %s2045_s16 = int_to_ptr.vmem [resolvable:$false] %s2044_s16 }
0x17b5   : > { %993 = vst.msk [vmem:[%s2756_s6 + $0xc] sm:$0xf] %vm743_vm6, %v991_v50  ;;  %p2042_p12 = pnand %p2041_p5, %p2810_p4  ;;  %p2047_p10 = scmp.lt.s32.totalorder %s2697_s27, %s2045_s16 }
0x17b7   : > { %s2695_s24 = scalar_lea.hbm %s2811_s17, %s1615_s11  ;;  %p2043_p1 = pneg %p2042_p12 }
0x17b8   : > { %v1156_v31 = vpop.permute.xlu1 %1155  ;;  %s2046_s11 = scalar_lea.vmem %s2045_s16, 256 }
0x17b9   : > { %1158 = vst.msk [vmem:[%s2756_s6 + $0x14] sm:$0xf] %vm743_vm6, %v1156_v31  ;;  %p2048_p8 = scmp.lt.s32.totalorder %s2046_s11, %s2040_s25 }
0x17bb   : > { %p2049_p3 = por %p2048_p8, %p2047_p10 }
0x17bd   : > { %p2050_p0 = pnand %p2049_p3, %p2043_p1 }
0x1813   : > { %v1326_v51 = vpop.permute.xlu0 %1325 }
0x1814   : > { %1328 = vst.msk [vmem:[%s437_s15] sm:$0xff] %vm660_vm2, %v1326_v51 }
0x1815   : > { %v1321_v32 = vpop.permute.xlu1 %1320 }
0x1816   : > { %2053 = shalt.err (!%p2050_p0)
}
0x1817   : > { %s2054_s18 = scalar_lea.hbm %s2695_s24, 128  ;;  %s2058_s1 = scalar_lea.hbm %s2811_s17, 256 }
0x1818   : > { %p2055_p13 = scmp.ne.s32.totalorder %s2695_s24, %s2054_s18  ;;  %p2059_p9 = scmp.lt.u32.totalorder %s2695_s24, %s2811_s17 }
0x1819   : > { %p2060_p7 = scmp.lt.u32.totalorder %s2058_s1, %s2054_s18  ;;  %p2062_p5 = scmp.lt.u32.totalorder %s2054_s18, %s2695_s24 }
0x181a   : > { %p2056_p2 = pnand %p2055_p13, %p2810_p4 }
0x181b   : > { %p2061_p6 = por %p2060_p7, %p2059_p9 }
0x181c   : > { %p2057_p11 = pneg %p2056_p2 }
0x181d   : > { %p2063_p12 = por %p2062_p5, %p2061_p6 }
0x181f   : > { %p2064_p1 = pnand %p2063_p12, %p2057_p11 }
0x1821   : > { %2067 = shalt.err (!%p2064_p1)
}
0x1822   : > { %1749 = dma.vmem_to_hbm [thread:$0]  (%p2810_p4), %s2697_s27, 128, %s2695_s24, %s1335_s23   ;;  %1323 = vst.msk [vmem:[%s2756_s6 + $0x1c] sm:$0xf] %vm743_vm6, %v1321_v32  ;;  %v1237_v33 = vpop.permute.xlu0 %1236 }
0x1823   : > { %1239 = vst.msk [vmem:[%s2756_s6 + $0x18] sm:$0xf] %vm743_vm6, %v1237_v33 }
0x1824 PF: > { %s2812_s26 = sld [smem:[#allocation19_spill]]  ;;  %s2813_s22 = sld [smem:[#allocation23_spill]] }
0x1825   : > { %p2815_p8 = scmp.ge.s32.totalorder %s2118_s30, 2 }
0x182a   : > { %s1384_s29 = sand.u32 1, %s2812_s26   ;;  %p2814_p10 = scmp.ne.s32.totalorder %s2813_s22, 0 }
0x182b   : > { %s1385_s19 = scalar_lea.sflag [#allocation5], %s1384_s29 }
0x182c   : > { %p1768_p3 = pnand %p2815_p8, %p2814_p10 }
0x182e   : > { %2097 = dma.done.wait (!%p1768_p3), %s1385_s19, 128  }
0x182f   : > { %2099 = vsyncadd (!%p1768_p3), %s1385_s19, 4294967168  ;;  %s1394_s27 = scalar_lea.sflag [#allocation13], %s1384_s29 }
0x1830   : > { %2101 = dma.done.wait (!%p1768_p3), %s1394_s27, 128  }
0x1831   : > { %2103 = vsyncadd (!%p1768_p3), %s1394_s27, 4294967168  ;;  %s2816_s30 = sld [smem:[#allocation21_spill]]  ;;  %s2817_s20 = sld [smem:[#allocation20_spill]] }
0x1832   : > { %s2818_s29 = sld [smem:[#allocation22_spill]]  ;;  %s2819_s27 = smov %s2110_s28 }
0x1837   : > { %p29_p4 = scmp.ge.s32.totalorder %s2816_s30, 4   ;;  %s2820_s28 = smov %s2817_s20 }
0x1839   :  { %31 = sbr.rel (!%p29_p4) target bundleno = 14 (0xe), region = 157 }
0x1840   :  { %1399 = vsyncpa [#allocation4], 1 }
0x1841   :  { %1401 = vsyncpa [#allocation4 + $0x1], 1 }
0x1842   :  { %1402 = vsyncpa [#allocation7], 1 }
0x1843   :  { %1404 = vsyncpa [#allocation7 + $0x1], 1 }
0x1844   :  { %1405 = vsyncpa [#allocation10], 1 }
0x1845   :  { %1407 = vsyncpa [#allocation10 + $0x1], 1 }
0x1846   :  { %1408 = vsyncpa [#allocation5], 1 }
0x1847   :  { %1410 = vsyncpa [#allocation5 + $0x1], 1 }
0x1848   :  { %1411 = vsyncpa [#allocation13], 1 }
0x1849   :  { %1413 = vsyncpa [#allocation13 + $0x1], 1 }

</bundles_post_ra>
